<compile_context>
chip_gen: v5e
topology: v5e:2x2
jax: 0.10.0
libtpu: 0.0.40
codegen_flags: <defaults>
</compile_context>

<pallas_src>
import jax
import jax.numpy as jnp
from jax.experimental import pallas as pl
from jax.experimental.pallas import tpu as pltpu

LATENT = 20
COND = 10
HIDDEN = 400
HIDDEN_PAD = 512      # 4 * 128, zero-padded hidden width
OUT = 784


def _decoder_kernel(lat_ref, cond_ref, w1l_ref, w1c_ref, b1_ref, w2_ref, b2_ref,
                    out_ref):
    # bf16 operands for the MXU, f32 accumulation, f32 elementwise tail.
    lat = lat_ref[...].astype(jnp.bfloat16)                      # (TB, 20)
    cnd = cond_ref[...].astype(jnp.bfloat16)                     # (TB, 10)

    # FC1 (split contraction replaces the concat) + bias + ReLU
    h = jnp.dot(lat, w1l_ref[...], preferred_element_type=jnp.float32)
    h = h + jnp.dot(cnd, w1c_ref[...], preferred_element_type=jnp.float32)
    h = jnp.maximum(h + b1_ref[...], 0.0)                        # (TB, 512) f32

    # FC2 + bias + sigmoid
    y = jnp.dot(h.astype(jnp.bfloat16), w2_ref[...],
                preferred_element_type=jnp.float32) + b2_ref[...]
    out_ref[...] = 1.0 / (1.0 + jnp.exp(-y))                     # (TB, 784) f32


def decoder_forward(latent, cond, kernel_params, *, batch_tile=256):
    """latent: (B, 20) f32, cond: (B, 10) f32 -> (B, 784) f32."""
    w1l, w1c, b1, w2, b2 = kernel_params
    B = latent.shape[0]
    tb = B if B <= batch_tile else batch_tile                    # tb == B or mult. of 8
    grid = (pl.cdiv(B, tb),)

    def resident(arr):   # full-array block, same index every step -> stays in VMEM
        return pl.BlockSpec(arr.shape, lambda i, a=arr: (0,) * a.ndim)

    return pl.pallas_call(
        _decoder_kernel,
        out_shape=jax.ShapeDtypeStruct((B, OUT), jnp.float32),
        grid=grid,
        in_specs=[
            pl.BlockSpec((tb, LATENT), lambda i: (i, 0)),
            pl.BlockSpec((tb, COND), lambda i: (i, 0)),
            resident(w1l), resident(w1c), resident(b1), resident(w2), resident(b2),
        ],
        out_specs=pl.BlockSpec((tb, OUT), lambda i: (i, 0)),
        compiler_params=pltpu.CompilerParams(dimension_semantics=("parallel",)),
    )(latent, cond, w1l, w1c, b1, w2, b2)


def init_params(key):
    """Deterministic synthetic params matching nn.Linear(30,400) / nn.Linear(400,784).

    Stored transposed vs PyTorch: W as (in, out), biases as 1-D (out,)."""
    k1, k2, k3, k4 = jax.random.split(key, 4)
    w1 = jax.random.normal(k1, (LATENT + COND, HIDDEN), jnp.float32) * 0.05
    b1 = jax.random.normal(k2, (HIDDEN,), jnp.float32) * 0.01
    w2 = jax.random.normal(k3, (HIDDEN, OUT), jnp.float32) * 0.05
    b2 = jax.random.normal(k4, (OUT,), jnp.float32) * 0.01
    return (w1, b1, w2, b2)


def prepare_kernel_params(params):
    """Split W1 (latent/cond rows), zero-pad hidden 400->512, cast weights to bf16."""
    w1, b1, w2, b2 = params
    pad_h = HIDDEN_PAD - HIDDEN
    w1p = jnp.pad(w1, ((0, 0), (0, pad_h)))
    w1l = w1p[:LATENT].astype(jnp.bfloat16)                       # (20, 512) bf16
    w1c = w1p[LATENT:].astype(jnp.bfloat16)                       # (10, 512) bf16
    b1p = jnp.pad(b1, (0, pad_h)).reshape(1, HIDDEN_PAD)          # (1, 512) f32
    w2p = jnp.pad(w2, ((0, pad_h), (0, 0))).astype(jnp.bfloat16)  # (512, 784) bf16
    b2p = b2.reshape(1, OUT)                                      # (1, 784) f32
    return (w1l, w1c, b1p, w2p, b2p)


def reference_forward(latent, cond, params):
    """Pure-JAX f32 reference mirroring the PyTorch Decoder.forward."""
    w1, b1, w2, b2 = params
    x = jnp.concatenate([latent, cond], axis=-1)
    h = jnp.maximum(x @ w1 + b1, 0.0)
    return jax.nn.sigmoid(h @ w2 + b2)


if __name__ == "__main__":
    key = jax.random.PRNGKey(0)
    k_params, k_lat, k_lab = jax.random.split(key, 3)

    B = 2
    latent = jax.random.normal(k_lat, (B, LATENT), jnp.float32)       # (B, 20)
    labels = jax.random.randint(k_lab, (B,), 0, COND)
    cond = jax.nn.one_hot(labels, COND, dtype=jnp.float32)            # (B, 10)

    params = init_params(k_params)
    kernel_params = prepare_kernel_params(params)

    out = decoder_forward(latent, cond, kernel_params)
    jax.block_until_ready(out)

    ref = reference_forward(latent, cond, params)
    assert out.shape == (B, OUT)
    # bf16 MXU operands vs pure-f32 reference -> relaxed tolerance
    assert jnp.allclose(out, ref, atol=2e-2, rtol=2e-2), \
        float(jnp.max(jnp.abs(out - ref)))

    print("KERNEL_OK")
</pallas_src>

<mosaic_0001>
module attributes {stable_mosaic.version = 11 : i64} {
  func.func @_decoder_kernel(%arg0: i32, %arg1: memref<2x20xf32, #tpu.memory_space<vmem>>, %arg2: memref<2x10xf32, #tpu.memory_space<vmem>>, %arg3: memref<20x512xbf16, #tpu.memory_space<vmem>>, %arg4: memref<10x512xbf16, #tpu.memory_space<vmem>>, %arg5: memref<1x512xf32, #tpu.memory_space<vmem>>, %arg6: memref<512x784xbf16, #tpu.memory_space<vmem>>, %arg7: memref<1x784xf32, #tpu.memory_space<vmem>>, %arg8: memref<2x784xf32, #tpu.memory_space<vmem>>) attributes {dimension_semantics = [#tpu.dimension_semantics<parallel>], iteration_bounds = array<i64: 1>, scalar_prefetch = 0 : i64, scratch_operands = 0 : i64, tpu.core_type = #tpu.core_type<tc>, window_params = [{transform_indices = @transform_0, window_bounds = array<i64: 2, 20>}, {transform_indices = @transform_1, window_bounds = array<i64: 2, 10>}, {pipeline_mode = #tpu.pipeline_mode<synchronous>, transform_indices = @transform_2, window_bounds = array<i64: 20, 512>}, {pipeline_mode = #tpu.pipeline_mode<synchronous>, transform_indices = @transform_3, window_bounds = array<i64: 10, 512>}, {pipeline_mode = #tpu.pipeline_mode<synchronous>, transform_indices = @transform_4, window_bounds = array<i64: 1, 512>}, {pipeline_mode = #tpu.pipeline_mode<synchronous>, transform_indices = @transform_5, window_bounds = array<i64: 512, 784>}, {pipeline_mode = #tpu.pipeline_mode<synchronous>, transform_indices = @transform_6, window_bounds = array<i64: 1, 784>}, {transform_indices = @transform_7, window_bounds = array<i64: 2, 784>}]} {
    %c0 = arith.constant 0 : index
    %c0_0 = arith.constant 0 : index
    %0 = vector.load %arg1[%c0, %c0_0] : memref<2x20xf32, #tpu.memory_space<vmem>>, vector<2x20xf32>
    %1 = arith.truncf %0 : vector<2x20xf32> to vector<2x20xbf16>
    %c0_1 = arith.constant 0 : index
    %c0_2 = arith.constant 0 : index
    %2 = vector.load %arg2[%c0_1, %c0_2] : memref<2x10xf32, #tpu.memory_space<vmem>>, vector<2x10xf32>
    %3 = arith.truncf %2 : vector<2x10xf32> to vector<2x10xbf16>
    %c0_3 = arith.constant 0 : index
    %c0_4 = arith.constant 0 : index
    %4 = vector.load %arg3[%c0_3, %c0_4] : memref<20x512xbf16, #tpu.memory_space<vmem>>, vector<20x512xbf16>
    %cst = arith.constant dense<0.000000e+00> : vector<2x512xf32>
    %5 = tpu.matmul %1, %4, %cst {dimension_numbers = #tpu.dot_dimension_numbers<[1], [0], [0], [1], [0, 0, 1, 1], [], []>} : vector<2x20xbf16>, vector<20x512xbf16>, vector<2x512xf32> -> vector<2x512xf32>
    %c0_5 = arith.constant 0 : index
    %c0_6 = arith.constant 0 : index
    %6 = vector.load %arg4[%c0_5, %c0_6] : memref<10x512xbf16, #tpu.memory_space<vmem>>, vector<10x512xbf16>
    %cst_7 = arith.constant dense<0.000000e+00> : vector<2x512xf32>
    %7 = tpu.matmul %3, %6, %cst_7 {dimension_numbers = #tpu.dot_dimension_numbers<[1], [0], [0], [1], [0, 0, 1, 1], [], []>} : vector<2x10xbf16>, vector<10x512xbf16>, vector<2x512xf32> -> vector<2x512xf32>
    %8 = arith.addf %5, %7 : vector<2x512xf32>
    %c0_8 = arith.constant 0 : index
    %c0_9 = arith.constant 0 : index
    %9 = vector.load %arg5[%c0_8, %c0_9] : memref<1x512xf32, #tpu.memory_space<vmem>>, vector<1x512xf32>
    %10 = vector.broadcast %9 : vector<1x512xf32> to vector<2x512xf32>
    %11 = arith.addf %8, %10 : vector<2x512xf32>
    %cst_10 = arith.constant 0.000000e+00 : f32
    %12 = vector.broadcast %cst_10 : f32 to vector<2x512xf32>
    %13 = arith.maximumf %11, %12 : vector<2x512xf32>
    %14 = arith.truncf %13 : vector<2x512xf32> to vector<2x512xbf16>
    %c0_11 = arith.constant 0 : index
    %c0_12 = arith.constant 0 : index
    %15 = vector.load %arg6[%c0_11, %c0_12] : memref<512x784xbf16, #tpu.memory_space<vmem>>, vector<512x784xbf16>
    %cst_13 = arith.constant dense<0.000000e+00> : vector<2x784xf32>
    %16 = tpu.matmul %14, %15, %cst_13 {dimension_numbers = #tpu.dot_dimension_numbers<[1], [0], [0], [1], [0, 0, 1, 1], [], []>} : vector<2x512xbf16>, vector<512x784xbf16>, vector<2x784xf32> -> vector<2x784xf32>
    %c0_14 = arith.constant 0 : index
    %c0_15 = arith.constant 0 : index
    %17 = vector.load %arg7[%c0_14, %c0_15] : memref<1x784xf32, #tpu.memory_space<vmem>>, vector<1x784xf32>
    %18 = vector.broadcast %17 : vector<1x784xf32> to vector<2x784xf32>
    %19 = arith.addf %16, %18 : vector<2x784xf32>
    %cst_16 = arith.constant 0.000000e+00 : f32
    %20 = vector.broadcast %cst_16 : f32 to vector<2x784xf32>
    %21 = arith.subf %20, %19 : vector<2x784xf32>
    %22 = math.exp %21 : vector<2x784xf32>
    %cst_17 = arith.constant 1.000000e+00 : f32
    %23 = vector.broadcast %cst_17 : f32 to vector<2x784xf32>
    %24 = arith.addf %23, %22 : vector<2x784xf32>
    %cst_18 = arith.constant 1.000000e+00 : f32
    %25 = vector.broadcast %cst_18 : f32 to vector<2x784xf32>
    %26 = arith.divf %25, %24 : vector<2x784xf32>
    %c0_19 = arith.constant 0 : index
    %c0_20 = arith.constant 0 : index
    %27 = vector.load %arg8[%c0_19, %c0_20] : memref<2x784xf32, #tpu.memory_space<vmem>>, vector<2x784xf32>
    tpu.vector_store %arg8[%c0_19, %c0_20], %26 {strides = array<i32>} : memref<2x784xf32, #tpu.memory_space<vmem>>, vector<2x784xf32>,
    return
  }
  func.func @transform_0(%arg0: i32) -> (i32, i32) {
    %c0_i32 = arith.constant 0 : i32
    %c0_i32_0 = arith.constant 0 : i32
    return %arg0, %c0_i32 : i32, i32
  }
  func.func @transform_1(%arg0: i32) -> (i32, i32) {
    %c0_i32 = arith.constant 0 : i32
    %c0_i32_0 = arith.constant 0 : i32
    return %arg0, %c0_i32 : i32, i32
  }
  func.func @transform_2(%arg0: i32) -> (i32, i32) {
    %c0_i32 = arith.constant 0 : i32
    %c0_i32_0 = arith.constant 0 : i32
    %c0_i32_1 = arith.constant 0 : i32
    return %c0_i32, %c0_i32_0 : i32, i32
  }
  func.func @transform_3(%arg0: i32) -> (i32, i32) {
    %c0_i32 = arith.constant 0 : i32
    %c0_i32_0 = arith.constant 0 : i32
    %c0_i32_1 = arith.constant 0 : i32
    return %c0_i32, %c0_i32_0 : i32, i32
  }
  func.func @transform_4(%arg0: i32) -> (i32, i32) {
    %c0_i32 = arith.constant 0 : i32
    %c0_i32_0 = arith.constant 0 : i32
    %c0_i32_1 = arith.constant 0 : i32
    return %c0_i32, %c0_i32_0 : i32, i32
  }
  func.func @transform_5(%arg0: i32) -> (i32, i32) {
    %c0_i32 = arith.constant 0 : i32
    %c0_i32_0 = arith.constant 0 : i32
    %c0_i32_1 = arith.constant 0 : i32
    return %c0_i32, %c0_i32_0 : i32, i32
  }
  func.func @transform_6(%arg0: i32) -> (i32, i32) {
    %c0_i32 = arith.constant 0 : i32
    %c0_i32_0 = arith.constant 0 : i32
    %c0_i32_1 = arith.constant 0 : i32
    return %c0_i32, %c0_i32_0 : i32, i32
  }
  func.func @transform_7(%arg0: i32) -> (i32, i32) {
    %c0_i32 = arith.constant 0 : i32
    %c0_i32_0 = arith.constant 0 : i32
    return %arg0, %c0_i32 : i32, i32
  }
}

</mosaic_0001>

<bundles_post_ra>
// kernel: tpu_custom_call.1
= control target key start
LH: loop header
LB: loop body
LE: loop exit
PB: predicated region body
PF: predicated region fallthrough
CT: control target
= control target key end

     0   :  { %vm62_vm0 = vcmask 1044480   ;;  %vm58_vm1 = vcmask 80896   ;;  %vm161_vm2 = vcmask 1041408   ;;  %vm157_vm3 = vcmask 162816   ;;  %s5014_s0 = inlined_call_operand.vmem [shape: f32[2,20], index: 0, kind: input, shape index: {}]   ;;  %s5015_s1 = inlined_call_operand.vmem [shape: f32[2,10], index: 1, kind: input, shape index: {}]   ;;  %s5016_s2 = inlined_call_operand.vmem [shape: bf16[20,512], index: 2, kind: input, shape index: {}]   ;;  %s5017_s3 = inlined_call_operand.vmem [shape: bf16[10,512], index: 3, kind: input, shape index: {}]   ;;  %s5018_s4 = inlined_call_operand.vmem [shape: f32[1,512], index: 4, kind: input, shape index: {}]   ;;  %s5019_s5 = inlined_call_operand.vmem [shape: bf16[512,784], index: 5, kind: input, shape index: {}]   ;;  %s5020_s6 = inlined_call_operand.vmem [shape: f32[1,784], index: 6, kind: input, shape index: {}]   ;;  %s5021_s7 = inlined_call_operand.hbm [shape: f32[2,784], index: 7, kind: output, shape index: {}]  }
   0x1   :  { %v2214_v0 = vld [vmem:[%s5017_s3] sm:$0xf]  ;;  %v3154_v1 = vld [vmem:[%s5017_s3 + $0xc] sm:$0x10]  ;;  %v3152_v3 = vld [vmem:[%s5017_s3 + $0x4] sm:$0xf] }
   0x2   :  { %v2215_v2 = vor.u32 %v3154_v1, %v2214_v0  ;;  %v2216_v4 = vld [vmem:[%s5017_s3 + $0x10] sm:$0x10]  ;;  %v2222_v5 = vld [vmem:[%s5017_s3 + $0x8] sm:$0xf]  ;;  %v3155_v7 = vld [vmem:[%s5017_s3 + $0x14] sm:$0x10] }
   0x3   :  { %v2219_v6 = vor.u32 %v3152_v3, %v2216_v4  ;;  %v3153_v8 = vld [vmem:[%s5017_s3 + $0xc] sm:$0xf]  ;;  %v2224_v9 = vld [vmem:[%s5017_s3 + $0x18] sm:$0x10]  ;;  %v2223_v11 = vor.u32 %v3155_v7, %v2222_v5  ;;  %v30_v13 = vld [vmem:[%s5015_s1] sm:$0x3] }
   0x4   :  { %v64_v10 = vsel %vm62_vm0, %v2215_v2, 0  ;;  %v2227_v12 = vor.u32 %v3153_v8, %v2224_v9  ;;  %v36_v14 = vld [vmem:[%s5016_s2 + $0x20] sm:$0x33]  ;;  %v31_v16 = vpack.c.bf16 %v30_v13, %v30_v13  ;;  %v37_v19 = vld [vmem:[%s5016_s2 + $0x28] sm:$0x33] }
   0x5   :  { %82 = vmatpush.bf16.msra.mxu0 %v64_v10  ;;  %v67_v15 = vsel %vm62_vm0, %v2219_v6, 0  ;;  %v141_v17 = vunpack.c.l.b16 %v36_v14  ;;  %v142_v18 = vunpack.c.h.b16 %v36_v14  ;;  %v70_v20 = vsel %vm62_vm0, %v2223_v11, 0  ;;  %v2234_v24 = vld [vmem:[%s5016_s2] sm:$0xf]  ;;  %v3150_v27 = vld [vmem:[%s5016_s2 + $0xc] sm:$0xf0] }
   0x6   :  { %95 = vmatpush.bf16.msra.mxu1 %v67_v15  ;;  %v73_v21 = vsel %vm62_vm0, %v2227_v12, 0  ;;  %v143_v22 = vunpack.c.l.b16 %v37_v19  ;;  %v144_v23 = vunpack.c.h.b16 %v37_v19  ;;  %108 = vmatpush.bf16.msra.mxu2 %v70_v20  ;;  %v3148_v28 = vld [vmem:[%s5016_s2 + $0x4] sm:$0xf]  ;;  %v2236_v29 = vld [vmem:[%s5016_s2 + $0x10] sm:$0xf0]  ;;  %v2235_v43 = vor.u32 %v3150_v27, %v2234_v24 }
   0x7   :  { %121 = vmatpush.bf16.msra.mxu3 %v73_v21  ;;  %v149_v25 = vpack.c.b16 %v141_v17, %v141_v17  ;;  %v150_v26 = vpack.c.b16 %v142_v18, %v142_v18  ;;  %v2242_v32 = vld [vmem:[%s5016_s2 + $0x8] sm:$0xf]  ;;  %v3151_v33 = vld [vmem:[%s5016_s2 + $0x14] sm:$0xf0]  ;;  %v3149_v34 = vld [vmem:[%s5016_s2 + $0xc] sm:$0xf]  ;;  %v2239_v44 = vor.u32 %v3148_v28, %v2236_v29 }
   0x8   :  { %2228 = vmatmul.msk.bf16.vlgmr.msra.gmra.mxu0 %vm58_vm1, %v31_v16  ;;  %v151_v30 = vpack.c.b16 %v143_v22, %v143_v22  ;;  %v152_v31 = vpack.c.b16 %v144_v23, %v144_v23  ;;  %v2244_v37 = vld [vmem:[%s5016_s2 + $0x18] sm:$0xf0]  ;;  %v2450_v38 = vld [vmem:[%s5019_s5 + $0x188] sm:$0xf]  ;;  %v3208_v41 = vld [vmem:[%s5019_s5 + $0x1a0] sm:$0xf0]  ;;  %v2243_v46 = vor.u32 %v3151_v33, %v2242_v32 }
   0x9   :  { %2229 = vmatmul.msk.bf16.vlgmr.msra.gmra.mxu1 %vm58_vm1, %v31_v16  ;;  %v163_v35 = vsel %vm161_vm2, %v149_v25, 0  ;;  %v166_v36 = vsel %vm161_vm2, %v150_v26, 0  ;;  %2230 = vmatmul.msk.bf16.vlgmr.msra.gmra.mxu2 %vm58_vm1, %v31_v16  ;;  %v2674_v42 = vld [vmem:[%s5019_s5 + $0x348] sm:$0xf]  ;;  %v3264_v45 = vld [vmem:[%s5019_s5 + $0x360] sm:$0xf0]  ;;  %v2247_v47 = vor.u32 %v3149_v34, %v2244_v37  ;;  %v2451_v50 = vor.u32 %v3208_v41, %v2450_v38 }
   0xa   :  { %2231 = vmatmul.msk.bf16.vlgmr.msra.gmra.mxu3 %vm58_vm1, %v31_v16  ;;  %v169_v39 = vsel %vm161_vm2, %v151_v30, 0  ;;  %v172_v40 = vsel %vm161_vm2, %v152_v31, 0  ;;  %180 = vmatpush.bf16.msrb.mxu0 %v163_v35  ;;  %v2422_v48 = vld [vmem:[%s5019_s5 + $0x150] sm:$0xf]  ;;  %v2898_v49 = vld [vmem:[%s5019_s5 + $0x508] sm:$0xf]  ;;  %v2675_v51 = vor.u32 %v3264_v45, %v2674_v42 }
   0xb   :  { %193 = vmatpush.bf16.msrb.mxu1 %v166_v36  ;;  %206 = vmatpush.bf16.msrb.mxu2 %v169_v39  ;;  %v3320_v52 = vld [vmem:[%s5019_s5 + $0x520] sm:$0xf0]  ;;  %v3122_v53 = vld [vmem:[%s5019_s5 + $0x6c8] sm:$0xf]  ;;  %v3201_v55 = vld [vmem:[%s5019_s5 + $0x168] sm:$0xf0] }
   0xc   :  { %219 = vmatpush.bf16.msrb.mxu3 %v172_v40  ;;  %v3376_v54 = vld [vmem:[%s5019_s5 + $0x6e0] sm:$0xf0]  ;;  %v2646_v56 = vld [vmem:[%s5019_s5 + $0x310] sm:$0xf]  ;;  %v3257_v57 = vld [vmem:[%s5019_s5 + $0x328] sm:$0xf0]  ;;  %v2899_v58 = vor.u32 %v3320_v52, %v2898_v49  ;;  %v2423_v1 = vor.u32 %v3201_v55, %v2422_v48 }
   0xd   :  { %v3123_v59 = vor.u32 %v3376_v54, %v3122_v53  ;;  %v2870_v60 = vld [vmem:[%s5019_s5 + $0x4d0] sm:$0xf]  ;;  %v3313_v61 = vld [vmem:[%s5019_s5 + $0x4e8] sm:$0xf0]  ;;  %v28_v0 = vld [vmem:[%s5014_s0] sm:$0x3]  ;;  %v2647_v2 = vor.u32 %v3257_v57, %v2646_v56 }
   0xe   :  { %181 = vmatpush.bf16.msrb.mxu0 %v2235_v43  ;;  %v3094_v62 = vld [vmem:[%s5019_s5 + $0x690] sm:$0xf]  ;;  %v3369_v63 = vld [vmem:[%s5019_s5 + $0x6a8] sm:$0xf0]  ;;  %v2394_v3 = vld [vmem:[%s5019_s5 + $0x118] sm:$0xf]  ;;  %v2871_v5 = vor.u32 %v3313_v61, %v2870_v60  ;;  %v29_v8 = vpack.c.bf16 %v28_v0, %v28_v0 }
   0xf   :  { %194 = vmatpush.bf16.msrb.mxu1 %v2239_v44  ;;  %207 = vmatpush.bf16.msrb.mxu2 %v2243_v46  ;;  %v3194_v4 = vld [vmem:[%s5019_s5 + $0x130] sm:$0xf0]  ;;  %v3095_v6 = vor.u32 %v3369_v63, %v3094_v62  ;;  %v2618_v7 = vld [vmem:[%s5019_s5 + $0x2d8] sm:$0xf]  ;;  %v2366_v15 = vld [vmem:[%s5019_s5 + $0xe0] sm:$0xf] }
  0x10   :  { %220 = vmatpush.bf16.msrb.mxu3 %v2247_v47  ;;  %v3250_v9 = vld [vmem:[%s5019_s5 + $0x2f0] sm:$0xf0]  ;;  %v2842_v10 = vld [vmem:[%s5019_s5 + $0x498] sm:$0xf]  ;;  %v2395_v12 = vor.u32 %v3194_v4, %v2394_v3  ;;  %v3187_v16 = vld [vmem:[%s5019_s5 + $0xf8] sm:$0xf0] }
  0x11   :  { %v3306_v11 = vld [vmem:[%s5019_s5 + $0x4b0] sm:$0xf0]  ;;  %v3066_v13 = vld [vmem:[%s5019_s5 + $0x658] sm:$0xf]  ;;  %v2619_v17 = vor.u32 %v3250_v9, %v2618_v7  ;;  %v2590_v18 = vld [vmem:[%s5019_s5 + $0x2a0] sm:$0xf]  ;;  %v2367_v24 = vor.u32 %v3187_v16, %v2366_v15 }
  0x12   :  { %1672 = vmatpush.bf16.msra.mxu0 %v2451_v50  ;;  %v3362_v14 = vld [vmem:[%s5019_s5 + $0x670] sm:$0xf0]  ;;  %v2843_v19 = vor.u32 %v3306_v11, %v2842_v10  ;;  %v3243_v20 = vld [vmem:[%s5019_s5 + $0x2b8] sm:$0xf0]  ;;  %v2814_v22 = vld [vmem:[%s5019_s5 + $0x460] sm:$0xf] }
  0x13   :  { %1685 = vmatpush.bf16.msra.mxu1 %v2675_v51  ;;  %1698 = vmatpush.bf16.msra.mxu2 %v2899_v58  ;;  %v3067_v21 = vor.u32 %v3362_v14, %v3066_v13  ;;  %v3299_v23 = vld [vmem:[%s5019_s5 + $0x478] sm:$0xf0]  ;;  %v3038_v25 = vld [vmem:[%s5019_s5 + $0x620] sm:$0xf]  ;;  %v2338_v27 = vld [vmem:[%s5019_s5 + $0xa8] sm:$0xf]  ;;  %v2591_v29 = vor.u32 %v3243_v20, %v2590_v18 }
  0x14   :  { %1711 = vmatpush.bf16.msra.mxu3 %v3123_v59  ;;  %v3355_v26 = vld [vmem:[%s5019_s5 + $0x638] sm:$0xf0]  ;;  %v3180_v28 = vld [vmem:[%s5019_s5 + $0xc0] sm:$0xf0]  ;;  %v2562_v30 = vld [vmem:[%s5019_s5 + $0x268] sm:$0xf]  ;;  %v2815_v31 = vor.u32 %v3299_v23, %v2814_v22 }
  0x15   :  { %v3236_v32 = vld [vmem:[%s5019_s5 + $0x280] sm:$0xf0]  ;;  %v3039_v33 = vor.u32 %v3355_v26, %v3038_v25  ;;  %v2786_v34 = vld [vmem:[%s5019_s5 + $0x428] sm:$0xf]  ;;  %v2339_v36 = vor.u32 %v3180_v28, %v2338_v27  ;;  %v2310_v39 = vld [vmem:[%s5019_s5 + $0x70] sm:$0xf] }
  0x16   :  { %1673 = vmatpush.bf16.msra.mxu0 %v2423_v1  ;;  %v3292_v35 = vld [vmem:[%s5019_s5 + $0x440] sm:$0xf0]  ;;  %v3010_v37 = vld [vmem:[%s5019_s5 + $0x5e8] sm:$0xf]  ;;  %v3173_v40 = vld [vmem:[%s5019_s5 + $0x88] sm:$0xf0]  ;;  %v2563_v41 = vor.u32 %v3236_v32, %v2562_v30 }
  0x17   :  { %1686 = vmatpush.bf16.msra.mxu1 %v2647_v2  ;;  %1699 = vmatpush.bf16.msra.mxu2 %v2871_v5  ;;  %v3348_v38 = vld [vmem:[%s5019_s5 + $0x600] sm:$0xf0]  ;;  %v2534_v42 = vld [vmem:[%s5019_s5 + $0x230] sm:$0xf]  ;;  %v2787_v43 = vor.u32 %v3292_v35, %v2786_v34 }
  0x18   :  { %1712 = vmatpush.bf16.msra.mxu3 %v3095_v6  ;;  %2248 = vmatmul.msk.bf16.vlgmr.msrb.gmra.mxu0 %vm157_vm3, %v29_v8 }
  0x19   :  { %2249 = vmatmul.msk.bf16.vlgmr.msrb.gmra.mxu1 %vm157_vm3, %v29_v8  ;;  %2250 = vmatmul.msk.bf16.vlgmr.msrb.gmra.mxu2 %vm157_vm3, %v29_v8 }
  0x1a   :  { %1674 = vmatpush.bf16.msra.mxu0 %v2395_v12  ;;  %2251 = vmatmul.msk.bf16.vlgmr.msrb.gmra.mxu3 %vm157_vm3, %v29_v8 }
  0x1b   :  { %1687 = vmatpush.bf16.msra.mxu1 %v2619_v17  ;;  %1700 = vmatpush.bf16.msra.mxu2 %v2843_v19 }
  0x1c   :  { %1713 = vmatpush.bf16.msra.mxu3 %v3067_v21 }
  0x1e   :  { %1675 = vmatpush.bf16.msra.mxu0 %v2367_v24 }
  0x1f   :  { %1688 = vmatpush.bf16.msra.mxu1 %v2591_v29  ;;  %1701 = vmatpush.bf16.msra.mxu2 %v2815_v31 }
  0x20   :  { %12 = vsyncpa [#allocation3], 0  ;;  %1714 = vmatpush.bf16.msra.mxu3 %v3039_v33  ;;  %v3229_v44 = vld [vmem:[%s5019_s5 + $0x248] sm:$0xf0]  ;;  %v3011_v45 = vor.u32 %v3348_v38, %v3010_v37  ;;  %v2758_v46 = vld [vmem:[%s5019_s5 + $0x3f0] sm:$0xf]  ;;  %v2311_v48 = vor.u32 %v3173_v40, %v2310_v39 }
  0x21   :  { %v3285_v47 = vld [vmem:[%s5019_s5 + $0x408] sm:$0xf0]  ;;  %v2982_v49 = vld [vmem:[%s5019_s5 + $0x5b0] sm:$0xf]  ;;  %v2282_v51 = vld [vmem:[%s5019_s5 + $0x38] sm:$0xf]  ;;  %v2535_v53 = vor.u32 %v3229_v44, %v2534_v42 }
  0x22   :  { %1676 = vmatpush.bf16.msra.mxu0 %v2339_v36  ;;  %v3341_v50 = vld [vmem:[%s5019_s5 + $0x5c8] sm:$0xf0]  ;;  %v3166_v52 = vld [vmem:[%s5019_s5 + $0x50] sm:$0xf0]  ;;  %v2506_v54 = vld [vmem:[%s5019_s5 + $0x1f8] sm:$0xf]  ;;  %v2759_v55 = vor.u32 %v3285_v47, %v2758_v46 }
  0x23   :  { %1689 = vmatpush.bf16.msra.mxu1 %v2563_v41  ;;  %1702 = vmatpush.bf16.msra.mxu2 %v2787_v43  ;;  %v3222_v56 = vld [vmem:[%s5019_s5 + $0x210] sm:$0xf0]  ;;  %v2983_v57 = vor.u32 %v3341_v50, %v2982_v49  ;;  %v2730_v58 = vld [vmem:[%s5019_s5 + $0x3b8] sm:$0xf]  ;;  %v2283_v60 = vor.u32 %v3166_v52, %v2282_v51  ;;  %v2254_v63 = vld [vmem:[%s5019_s5] sm:$0xf] }
  0x24   :  { %1715 = vmatpush.bf16.msra.mxu3 %v3011_v45  ;;  %v3278_v59 = vld [vmem:[%s5019_s5 + $0x3d0] sm:$0xf0]  ;;  %v2954_v61 = vld [vmem:[%s5019_s5 + $0x578] sm:$0xf]  ;;  %v3159_v0 = vld [vmem:[%s5019_s5 + $0x18] sm:$0xf0]  ;;  %v2507_v1 = vor.u32 %v3222_v56, %v2506_v54 }
  0x25   :  { %v3334_v62 = vld [vmem:[%s5019_s5 + $0x590] sm:$0xf0]  ;;  %v3205_v2 = vld [vmem:[%s5019_s5 + $0x18c] sm:$0xf]  ;;  %v2452_v3 = vld [vmem:[%s5019_s5 + $0x1a4] sm:$0xf0]  ;;  %v2731_v4 = vor.u32 %v3278_v59, %v2730_v58  ;;  %v2255_v8 = vor.u32 %v3159_v0, %v2254_v63 }
  0x26   :  { %1677 = vmatpush.bf16.msra.mxu0 %v2311_v48  ;;  %v2478_v5 = vld [vmem:[%s5019_s5 + $0x1c0] sm:$0xf]  ;;  %v3215_v6 = vld [vmem:[%s5019_s5 + $0x1d8] sm:$0xf0]  ;;  %v2955_v7 = vor.u32 %v3334_v62, %v2954_v61  ;;  %v3261_v9 = vld [vmem:[%s5019_s5 + $0x34c] sm:$0xf]  ;;  %v2455_v11 = vor.u32 %v3205_v2, %v2452_v3 }
  0x27   :  { %1690 = vmatpush.bf16.msra.mxu1 %v2535_v53  ;;  %1703 = vmatpush.bf16.msra.mxu2 %v2759_v55  ;;  %v2676_v10 = vld [vmem:[%s5019_s5 + $0x364] sm:$0xf0]  ;;  %v2479_v12 = vor.u32 %v3215_v6, %v2478_v5  ;;  %v3198_v14 = vld [vmem:[%s5019_s5 + $0x154] sm:$0xf]  ;;  %v2424_v15 = vld [vmem:[%s5019_s5 + $0x16c] sm:$0xf0] }
  0x28   :  { %1716 = vmatpush.bf16.msra.mxu3 %v2983_v57  ;;  %v2679_v13 = vor.u32 %v3261_v9, %v2676_v10  ;;  %v3254_v16 = vld [vmem:[%s5019_s5 + $0x314] sm:$0xf]  ;;  %v2427_v17 = vor.u32 %v3198_v14, %v2424_v15  ;;  %v2648_v18 = vld [vmem:[%s5019_s5 + $0x32c] sm:$0xf0]  ;;  %v2702_v19 = vld [vmem:[%s5019_s5 + $0x380] sm:$0xf] }
  0x29   :  { %v3271_v20 = vld [vmem:[%s5019_s5 + $0x398] sm:$0xf0]  ;;  %v2651_v21 = vor.u32 %v3254_v16, %v2648_v18  ;;  %v2926_v23 = vld [vmem:[%s5019_s5 + $0x540] sm:$0xf]  ;;  %v3317_v25 = vld [vmem:[%s5019_s5 + $0x50c] sm:$0xf] }
  0x2a   :  { %1678 = vmatpush.bf16.msra.mxu0 %v2283_v60  ;;  %v2703_v22 = vor.u32 %v3271_v20, %v2702_v19  ;;  %v3327_v24 = vld [vmem:[%s5019_s5 + $0x558] sm:$0xf0]  ;;  %v2900_v27 = vld [vmem:[%s5019_s5 + $0x524] sm:$0xf0]  ;;  %v3373_v28 = vld [vmem:[%s5019_s5 + $0x6cc] sm:$0xf] }
  0x2b   :  { %1691 = vmatpush.bf16.msra.mxu1 %v2507_v1  ;;  %1704 = vmatpush.bf16.msra.mxu2 %v2731_v4  ;;  %v2927_v26 = vor.u32 %v3327_v24, %v2926_v23  ;;  %v3124_v29 = vld [vmem:[%s5019_s5 + $0x6e4] sm:$0xf0]  ;;  %v2903_v30 = vor.u32 %v3317_v25, %v2900_v27  ;;  %v3191_v32 = vld [vmem:[%s5019_s5 + $0x11c] sm:$0xf]  ;;  %v2396_v33 = vld [vmem:[%s5019_s5 + $0x134] sm:$0xf0] }
  0x2c   :  { %1717 = vmatpush.bf16.msra.mxu3 %v2955_v7  ;;  %v3127_v31 = vor.u32 %v3373_v28, %v3124_v29  ;;  %v3247_v34 = vld [vmem:[%s5019_s5 + $0x2dc] sm:$0xf]  ;;  %v2399_v35 = vor.u32 %v3191_v32, %v2396_v33  ;;  %v2620_v36 = vld [vmem:[%s5019_s5 + $0x2f4] sm:$0xf0]  ;;  %v3310_v38 = vld [vmem:[%s5019_s5 + $0x4d4] sm:$0xf] }
  0x2d   :  { %v2623_v37 = vor.u32 %v3247_v34, %v2620_v36  ;;  %v2872_v39 = vld [vmem:[%s5019_s5 + $0x4ec] sm:$0xf0]  ;;  %v3366_v40 = vld [vmem:[%s5019_s5 + $0x694] sm:$0xf]  ;;  %v3184_v44 = vld [vmem:[%s5019_s5 + $0xe4] sm:$0xf] }
  0x2e   :  { %1679 = vmatpush.bf16.msra.mxu0 %v2255_v8  ;;  %v2875_v41 = vor.u32 %v3310_v38, %v2872_v39  ;;  %v3096_v42 = vld [vmem:[%s5019_s5 + $0x6ac] sm:$0xf0]  ;;  %v2368_v45 = vld [vmem:[%s5019_s5 + $0xfc] sm:$0xf0]  ;;  %v3240_v46 = vld [vmem:[%s5019_s5 + $0x2a4] sm:$0xf] }
  0x2f   :  { %1692 = vmatpush.bf16.msra.mxu1 %v2479_v12  ;;  %1705 = vmatpush.bf16.msra.mxu2 %v2703_v22  ;;  %v3099_v43 = vor.u32 %v3366_v40, %v3096_v42  ;;  %v2371_v47 = vor.u32 %v3184_v44, %v2368_v45  ;;  %v2592_v48 = vld [vmem:[%s5019_s5 + $0x2bc] sm:$0xf0]  ;;  %v3303_v50 = vld [vmem:[%s5019_s5 + $0x49c] sm:$0xf]  ;;  %v2844_v51 = vld [vmem:[%s5019_s5 + $0x4b4] sm:$0xf0] }
  0x30   :  { %1718 = vmatpush.bf16.msra.mxu3 %v2927_v26  ;;  %v2595_v49 = vor.u32 %v3240_v46, %v2592_v48  ;;  %v3359_v52 = vld [vmem:[%s5019_s5 + $0x65c] sm:$0xf]  ;;  %v2847_v53 = vor.u32 %v3303_v50, %v2844_v51  ;;  %v3068_v54 = vld [vmem:[%s5019_s5 + $0x674] sm:$0xf0]  ;;  %v3177_v55 = vld [vmem:[%s5019_s5 + $0xac] sm:$0xf] }
  0x31   :  { %v2340_v56 = vld [vmem:[%s5019_s5 + $0xc4] sm:$0xf0]  ;;  %v3071_v57 = vor.u32 %v3359_v52, %v3068_v54  ;;  %v3233_v59 = vld [vmem:[%s5019_s5 + $0x26c] sm:$0xf]  ;;  %v3296_v62 = vld [vmem:[%s5019_s5 + $0x464] sm:$0xf] }
  0x32   :  { %1724 = vmatpush.bf16.msrb.mxu0 %v2455_v11  ;;  %v2343_v58 = vor.u32 %v3177_v55, %v2340_v56  ;;  %v2564_v60 = vld [vmem:[%s5019_s5 + $0x284] sm:$0xf0]  ;;  %v2816_v63 = vld [vmem:[%s5019_s5 + $0x47c] sm:$0xf0]  ;;  %v3352_v0 = vld [vmem:[%s5019_s5 + $0x624] sm:$0xf] }
  0x33   :  { %1737 = vmatpush.bf16.msrb.mxu1 %v2679_v13  ;;  %1750 = vmatpush.bf16.msrb.mxu2 %v2903_v30  ;;  %v2567_v61 = vor.u32 %v3233_v59, %v2564_v60  ;;  %v2819_v1 = vor.u32 %v3296_v62, %v2816_v63  ;;  %v3040_v2 = vld [vmem:[%s5019_s5 + $0x63c] sm:$0xf0]  ;;  %v3170_v4 = vld [vmem:[%s5019_s5 + $0x74] sm:$0xf]  ;;  %v2312_v5 = vld [vmem:[%s5019_s5 + $0x8c] sm:$0xf0] }
  0x34   :  { %1763 = vmatpush.bf16.msrb.mxu3 %v3127_v31  ;;  %v3043_v3 = vor.u32 %v3352_v0, %v3040_v2  ;;  %v3226_v6 = vld [vmem:[%s5019_s5 + $0x234] sm:$0xf]  ;;  %v2315_v7 = vor.u32 %v3170_v4, %v2312_v5  ;;  %v2536_v8 = vld [vmem:[%s5019_s5 + $0x24c] sm:$0xf0]  ;;  %v3289_v10 = vld [vmem:[%s5019_s5 + $0x42c] sm:$0xf] }
  0x35   :  { %v2539_v9 = vor.u32 %v3226_v6, %v2536_v8  ;;  %v2788_v11 = vld [vmem:[%s5019_s5 + $0x444] sm:$0xf0]  ;;  %v3345_v12 = vld [vmem:[%s5019_s5 + $0x5ec] sm:$0xf]  ;;  %v3163_v16 = vld [vmem:[%s5019_s5 + $0x3c] sm:$0xf] }
  0x36   :  { %1725 = vmatpush.bf16.msrb.mxu0 %v2427_v17  ;;  %v2791_v13 = vor.u32 %v3289_v10, %v2788_v11  ;;  %v3012_v14 = vld [vmem:[%s5019_s5 + $0x604] sm:$0xf0]  ;;  %v2284_v17 = vld [vmem:[%s5019_s5 + $0x54] sm:$0xf0]  ;;  %v3219_v19 = vld [vmem:[%s5019_s5 + $0x1fc] sm:$0xf] }
  0x37   :  { %1738 = vmatpush.bf16.msrb.mxu1 %v2651_v21  ;;  %1751 = vmatpush.bf16.msrb.mxu2 %v2875_v41  ;;  %v3015_v15 = vor.u32 %v3345_v12, %v3012_v14  ;;  %v2287_v18 = vor.u32 %v3163_v16, %v2284_v17  ;;  %v2508_v20 = vld [vmem:[%s5019_s5 + $0x214] sm:$0xf0]  ;;  %v3282_v22 = vld [vmem:[%s5019_s5 + $0x3f4] sm:$0xf]  ;;  %v2760_v23 = vld [vmem:[%s5019_s5 + $0x40c] sm:$0xf0] }
  0x38   :  { %1764 = vmatpush.bf16.msrb.mxu3 %v3099_v43  ;;  %v2511_v21 = vor.u32 %v3219_v19, %v2508_v20  ;;  %v3338_v24 = vld [vmem:[%s5019_s5 + $0x5b4] sm:$0xf]  ;;  %v2763_v25 = vor.u32 %v3282_v22, %v2760_v23  ;;  %v2984_v26 = vld [vmem:[%s5019_s5 + $0x5cc] sm:$0xf0]  ;;  %v3156_v28 = vld [vmem:[%s5019_s5 + $0x4] sm:$0xf] }
  0x39   :  { %v2987_v27 = vor.u32 %v3338_v24, %v2984_v26  ;;  %v2256_v29 = vld [vmem:[%s5019_s5 + $0x1c] sm:$0xf0]  ;;  %v3212_v30 = vld [vmem:[%s5019_s5 + $0x1c4] sm:$0xf]  ;;  %v3275_v34 = vld [vmem:[%s5019_s5 + $0x3bc] sm:$0xf] }
  0x3a   :  { %1726 = vmatpush.bf16.msrb.mxu0 %v2399_v35  ;;  %v2259_v31 = vor.u32 %v3156_v28, %v2256_v29  ;;  %v2480_v32 = vld [vmem:[%s5019_s5 + $0x1dc] sm:$0xf0]  ;;  %v2732_v35 = vld [vmem:[%s5019_s5 + $0x3d4] sm:$0xf0]  ;;  %v3331_v36 = vld [vmem:[%s5019_s5 + $0x57c] sm:$0xf] }
  0x3b   :  { %1739 = vmatpush.bf16.msrb.mxu1 %v2623_v37  ;;  %1752 = vmatpush.bf16.msrb.mxu2 %v2847_v53  ;;  %v2483_v33 = vor.u32 %v3212_v30, %v2480_v32  ;;  %v2735_v37 = vor.u32 %v3275_v34, %v2732_v35  ;;  %v2956_v38 = vld [vmem:[%s5019_s5 + $0x594] sm:$0xf0]  ;;  %v3268_v40 = vld [vmem:[%s5019_s5 + $0x384] sm:$0xf]  ;;  %v2704_v41 = vld [vmem:[%s5019_s5 + $0x39c] sm:$0xf0] }
  0x3c   :  { %1765 = vmatpush.bf16.msrb.mxu3 %v3071_v57  ;;  %v2959_v39 = vor.u32 %v3331_v36, %v2956_v38  ;;  %v2707_v42 = vor.u32 %v3268_v40, %v2704_v41  ;;  %v3324_v43 = vld [vmem:[%s5019_s5 + $0x544] sm:$0xf]  ;;  %v2928_v44 = vld [vmem:[%s5019_s5 + $0x55c] sm:$0xf0]  ;;  %v3209_v0 = vld [vmem:[%s5019_s5 + $0x1a8] sm:$0xf0] }
  0x3d   :  { %v2931_v45 = vor.u32 %v3324_v43, %v2928_v44  ;;  %v226_v52 = vld [vmem:[%s5018_s4] sm:$0xf]  ;;  %v3265_v2 = vld [vmem:[%s5019_s5 + $0x368] sm:$0xf0]  ;;  %v3202_v10 = vld [vmem:[%s5019_s5 + $0x170] sm:$0xf0] }
  0x3e   :  { %1727 = vmatpush.bf16.msrb.mxu0 %v2371_v47  ;;  %v228_v55 = vperm.slane %v226_v52, 0  ;;  %v229_v56 = vperm.slane %v226_v52, 1  ;;  %v230_v5 = vperm.slane %v226_v52, 2  ;;  %v231_v6 = vperm.slane %v226_v52, 3  ;;  %v3258_v16 = vld [vmem:[%s5019_s5 + $0x330] sm:$0xf0] }
  0x3f   :  { %1740 = vmatpush.bf16.msrb.mxu1 %v2595_v49  ;;  %1753 = vmatpush.bf16.msrb.mxu2 %v2819_v1  ;;  %v2682_v1 = vld [vmem:[%s5019_s5 + $0x350] sm:$0xf]  ;;  %v3321_v23 = vld [vmem:[%s5019_s5 + $0x528] sm:$0xf0]  ;;  %v2402_v29 = vld [vmem:[%s5019_s5 + $0x120] sm:$0xf] }
  0x40   :  { %1766 = vmatpush.bf16.msrb.mxu3 %v3043_v3  ;;  %v2683_v8 = vor.u32 %v3265_v2, %v2682_v1  ;;  %v2906_v22 = vld [vmem:[%s5019_s5 + $0x510] sm:$0xf]  ;;  %v3377_v28 = vld [vmem:[%s5019_s5 + $0x6e8] sm:$0xf0]  ;;  %v3195_v30 = vld [vmem:[%s5019_s5 + $0x138] sm:$0xf0] }
  0x41   :  { %v3130_v24 = vld [vmem:[%s5019_s5 + $0x6d0] sm:$0xf]  ;;  %v3251_v32 = vld [vmem:[%s5019_s5 + $0x2f8] sm:$0xf0]  ;;  %v2907_v35 = vor.u32 %v3321_v23, %v2906_v22  ;;  %v2878_v38 = vld [vmem:[%s5019_s5 + $0x4d8] sm:$0xf] }
  0x42   :  { %1728 = vmatpush.bf16.msrb.mxu0 %v2343_v58  ;;  %v3131_v36 = vor.u32 %v3377_v28, %v3130_v24  ;;  %v3102_v43 = vld [vmem:[%s5019_s5 + $0x698] sm:$0xf]  ;;  %v3370_v44 = vld [vmem:[%s5019_s5 + $0x6b0] sm:$0xf0]  ;;  %v2822_v1 = vld [vmem:[%s5019_s5 + $0x468] sm:$0xf] }
  0x43   :  { %1741 = vmatpush.bf16.msrb.mxu1 %v2567_v61  ;;  %1754 = vmatpush.bf16.msrb.mxu2 %v2791_v13  ;;  %v2458_v61 = vld [vmem:[%s5019_s5 + $0x190] sm:$0xf]  ;;  %v3103_v52 = vor.u32 %v3370_v44, %v3102_v43  ;;  %v3300_v2 = vld [vmem:[%s5019_s5 + $0x480] sm:$0xf0]  ;;  %v3167_v22 = vld [vmem:[%s5019_s5 + $0x58] sm:$0xf0] }
  0x44   :  { %1767 = vmatpush.bf16.msrb.mxu3 %v3015_v15  ;;  %v2654_v15 = vld [vmem:[%s5019_s5 + $0x318] sm:$0xf]  ;;  %v2514_v23 = vld [vmem:[%s5019_s5 + $0x200] sm:$0xf]  ;;  %v3223_v24 = vld [vmem:[%s5019_s5 + $0x218] sm:$0xf0] }
  0x45   :  { %v3286_v28 = vld [vmem:[%s5019_s5 + $0x410] sm:$0xf0]  ;;  %v2684_v44 = vld [vmem:[%s5019_s5 + $0x36c] sm:$0xf0]  ;;  %s2203_s25 = sshll.u32 %s5021_s7, 4  ;;  %s2204_s25 = int_to_ptr.hbm [resolvable:$true] %s2203_s25 }
  0x46   :  { %1729 = vmatpush.bf16.msrb.mxu0 %v2315_v7  ;;  %v2459_v7 = vor.u32 %v3209_v0, %v2458_v61  ;;  %v2570_v61 = vld [vmem:[%s5019_s5 + $0x270] sm:$0xf]  ;;  %v3262_v43 = vld [vmem:[%s5019_s5 + $0x354] sm:$0xf] }
  0x47   :  { %1742 = vmatpush.bf16.msrb.mxu1 %v2539_v9  ;;  %1755 = vmatpush.bf16.msrb.mxu2 %v2763_v25  ;;  %v2430_v9 = vld [vmem:[%s5019_s5 + $0x158] sm:$0xf] }
  0x48   :  { %1768 = vmatpush.bf16.msrb.mxu3 %v2987_v27  ;;  %v2655_v27 = vor.u32 %v3258_v16, %v2654_v15  ;;  %v2794_v15 = vld [vmem:[%s5019_s5 + $0x430] sm:$0xf]  ;;  %v3293_v16 = vld [vmem:[%s5019_s5 + $0x448] sm:$0xf0] }
  0x4a   :  { %1730 = vmatpush.bf16.msrb.mxu0 %v2287_v18 }
  0x4b   :  { %1743 = vmatpush.bf16.msrb.mxu1 %v2511_v21  ;;  %1756 = vmatpush.bf16.msrb.mxu2 %v2735_v37  ;;  %v2431_v21 = vor.u32 %v3202_v10, %v2430_v9  ;;  %v2403_v37 = vor.u32 %v3195_v30, %v2402_v29  ;;  %v2542_v9 = vld [vmem:[%s5019_s5 + $0x238] sm:$0xf]  ;;  %v3230_v10 = vld [vmem:[%s5019_s5 + $0x250] sm:$0xf0] }
  0x4c   :  { %1769 = vmatpush.bf16.msrb.mxu3 %v2959_v39  ;;  %v3314_v39 = vld [vmem:[%s5019_s5 + $0x4f0] sm:$0xf0]  ;;  %v2990_v29 = vld [vmem:[%s5019_s5 + $0x5b8] sm:$0xf] }
  0x4d   :  { %v3342_v30 = vld [vmem:[%s5019_s5 + $0x5d0] sm:$0xf0] }
  0x4e   :  { %1731 = vmatpush.bf16.msrb.mxu0 %v2259_v31  ;;  %v2626_v31 = vld [vmem:[%s5019_s5 + $0x2e0] sm:$0xf] }
  0x4f   :  { %1744 = vmatpush.bf16.msrb.mxu1 %v2483_v33  ;;  %1757 = vmatpush.bf16.msrb.mxu2 %v2707_v42  ;;  %v2627_v42 = vor.u32 %v3251_v32, %v2626_v31  ;;  %v2515_v32 = vor.u32 %v3223_v24, %v2514_v23  ;;  %v3241_v23 = vld [vmem:[%s5019_s5 + $0x2ac] sm:$0xf]  ;;  %v2600_v24 = vld [vmem:[%s5019_s5 + $0x2c4] sm:$0xf0] }
  0x50   :  { %1770 = vmatpush.bf16.msrb.mxu3 %v2931_v45  ;;  %v2374_v45 = vld [vmem:[%s5019_s5 + $0xe8] sm:$0xf] }
  0x85   :  { %v84_v46 = vpop.f32.mrf.mxu0 }
  0x86   :  { %v97_v47 = vpop.f32.mrf.mxu1 }
  0x8c   :  { %v110_v48 = vpop.f32.mrf.mxu2 }
  0x8d   :  { %v123_v49 = vpop.f32.mrf.mxu3  ;;  %v86_v50 = vpop.f32.mrf.mxu0 }
  0x8e   :  { %v99_v51 = vpop.f32.mrf.mxu1  ;;  %v3244_v50 = vld [vmem:[%s5019_s5 + $0x2c0] sm:$0xf0] }
  0x8f   :  { %v2879_v51 = vor.u32 %v3314_v39, %v2878_v38  ;;  %v2460_v38 = vld [vmem:[%s5019_s5 + $0x1ac] sm:$0xf0] }
  0x94   :  { %v112_v53 = vpop.f32.mrf.mxu2 }
  0x95   :  { %v125_v54 = vpop.f32.mrf.mxu3  ;;  %v183_v57 = vpop.f32.mrf.mxu0  ;;  %v2850_v53 = vld [vmem:[%s5019_s5 + $0x4a0] sm:$0xf] }
  0x96   :  { %v196_v58 = vpop.f32.mrf.mxu1  ;;  %v184_v59 = vadd.f32 %v183_v57, %v84_v46  ;;  %v3074_v57 = vld [vmem:[%s5019_s5 + $0x660] sm:$0xf] }
  0x97   :  { %v197_v60 = vadd.f32 %v196_v58, %v97_v47  ;;  %v3363_v58 = vld [vmem:[%s5019_s5 + $0x678] sm:$0xf0] }
  0x98   :  { %v236_v62 = vadd.f32 %v228_v55, %v184_v59  ;;  %v2346_v59 = vld [vmem:[%s5019_s5 + $0xb0] sm:$0xf]  ;;  %v3075_v0 = vor.u32 %v3363_v58, %v3074_v57  ;;  %v2656_v58 = vld [vmem:[%s5019_s5 + $0x334] sm:$0xf0] }
  0x99   :  { %v237_v63 = vadd.f32 %v229_v56, %v197_v60  ;;  %v3307_v56 = vld [vmem:[%s5019_s5 + $0x4b8] sm:$0xf0]  ;;  %v3181_v60 = vld [vmem:[%s5019_s5 + $0xc8] sm:$0xf0] }
  0x9a   :  { %v240_v3 = vmax.f32 %v236_v62, 0.0  ;;  %v3237_v62 = vld [vmem:[%s5019_s5 + $0x288] sm:$0xf0] }
  0x9b   :  { %v241_v4 = vmax.f32 %v237_v63, 0.0  ;;  %v2851_v63 = vor.u32 %v3307_v56, %v2850_v53  ;;  %v3199_v53 = vld [vmem:[%s5019_s5 + $0x15c] sm:$0xf] }
  0x9c   :  { %v3957_v11 = vpack.c.bf16 %v240_v3, %v240_v3  ;;  %v209_v13 = vpop.f32.mrf.mxu2  ;;  %v3046_v3 = vld [vmem:[%s5019_s5 + $0x628] sm:$0xf] }
  0x9d   :  { %v3959_v12 = vpack.c.bf16 %v241_v4, %v241_v4  ;;  %v222_v14 = vpop.f32.mrf.mxu3  ;;  %v210_v17 = vadd.f32 %v209_v13, %v110_v48  ;;  %v185_v19 = vpop.f32.mrf.mxu0  ;;  %v3188_v48 = vld [vmem:[%s5019_s5 + $0x100] sm:$0xf0]  ;;  %v2823_v13 = vor.u32 %v3300_v2, %v2822_v1  ;;  %v3374_v1 = vld [vmem:[%s5019_s5 + $0x6d4] sm:$0xf]  ;;  %v3132_v2 = vld [vmem:[%s5019_s5 + $0x6ec] sm:$0xf0] }
  0x9e   :  { %v223_v18 = vadd.f32 %v222_v14, %v123_v49  ;;  %v198_v20 = vpop.f32.mrf.mxu1  ;;  %1680 = vmatmul.bf16.vlgmr.msra.gmra.mxu0 %v3957_v11  ;;  %v2598_v49 = vld [vmem:[%s5019_s5 + $0x2a8] sm:$0xf]  ;;  %v2375_v54 = vor.u32 %v3188_v48, %v2374_v45  ;;  %v3356_v4 = vld [vmem:[%s5019_s5 + $0x640] sm:$0xf0]  ;;  %v2738_v45 = vld [vmem:[%s5019_s5 + $0x3c0] sm:$0xf] }
  0x9f   :  { %1693 = vmatmul.bf16.vlgmr.msra.gmra.mxu1 %v3959_v12  ;;  %v238_v25 = vadd.f32 %v230_v5, %v210_v17  ;;  %1776 = vmatpush.bf16.msra.mxu0 %v2459_v7  ;;  %v2599_v55 = vor.u32 %v3244_v50, %v2598_v49  ;;  %v2347_v5 = vor.u32 %v3181_v60, %v2346_v59  ;;  %v2318_v7 = vld [vmem:[%s5019_s5 + $0x78] sm:$0xf]  ;;  %v3018_v17 = vld [vmem:[%s5019_s5 + $0x5f0] sm:$0xf]  ;;  %v3335_v48 = vld [vmem:[%s5019_s5 + $0x598] sm:$0xf0] }
  0xa0   :  { %v239_v26 = vadd.f32 %v231_v6, %v223_v18  ;;  %1789 = vmatpush.bf16.msra.mxu1 %v2683_v8  ;;  %v2571_v6 = vor.u32 %v3237_v62, %v2570_v61  ;;  %v3174_v8 = vld [vmem:[%s5019_s5 + $0x90] sm:$0xf0]  ;;  %v3047_v14 = vor.u32 %v3356_v4, %v3046_v3  ;;  %v3349_v18 = vld [vmem:[%s5019_s5 + $0x608] sm:$0xf0]  ;;  %v2543_v20 = vor.u32 %v3230_v10, %v2542_v9  ;;  %v2710_v59 = vld [vmem:[%s5019_s5 + $0x388] sm:$0xf] }
  0xa1   :  { %v242_v33 = vmax.f32 %v238_v25, 0.0  ;;  %v2319_v19 = vor.u32 %v3174_v8, %v2318_v7  ;;  %v2795_v25 = vor.u32 %v3293_v16, %v2794_v15  ;;  %v3272_v60 = vld [vmem:[%s5019_s5 + $0x3a0] sm:$0xf0]  ;;  %v2934_v61 = vld [vmem:[%s5019_s5 + $0x548] sm:$0xf] }
  0xa2   :  { %v243_v34 = vmax.f32 %v239_v26, 0.0  ;;  %v3019_v26 = vor.u32 %v3349_v18, %v3018_v17  ;;  %v3328_v62 = vld [vmem:[%s5019_s5 + $0x560] sm:$0xf0]  ;;  %v2404_v8 = vld [vmem:[%s5019_s5 + $0x13c] sm:$0xf0] }
  0xa3   :  { %v3999_v40 = vpack.c.bf16 %v242_v33, %v242_v33  ;;  %1777 = vmatpush.bf16.msra.mxu0 %v2431_v21  ;;  %v2290_v21 = vld [vmem:[%s5019_s5 + $0x40] sm:$0xf]  ;;  %v2262_v33 = vld [vmem:[%s5019_s5 + $0x8] sm:$0xf]  ;;  %v2935_v7 = vor.u32 %v3328_v62, %v2934_v61  ;;  %v3248_v9 = vld [vmem:[%s5019_s5 + $0x2e4] sm:$0xf] }
  0xa4   :  { %v4001_v41 = vpack.c.bf16 %v243_v34, %v243_v34  ;;  %1790 = vmatpush.bf16.msra.mxu1 %v2655_v27  ;;  %v211_v46 = vpop.f32.mrf.mxu2  ;;  %v2766_v27 = vld [vmem:[%s5019_s5 + $0x3f8] sm:$0xf]  ;;  %v2291_v31 = vor.u32 %v3167_v22, %v2290_v21  ;;  %v3160_v34 = vld [vmem:[%s5019_s5 + $0x20] sm:$0xf0]  ;;  %v2628_v10 = vld [vmem:[%s5019_s5 + $0x2fc] sm:$0xf0] }
  0xa5   :  { %v224_v47 = vpop.f32.mrf.mxu3  ;;  %1706 = vmatmul.bf16.vlgmr.msra.gmra.mxu2 %v3999_v40  ;;  %v2767_v39 = vor.u32 %v3286_v28, %v2766_v27  ;;  %v3279_v46 = vld [vmem:[%s5019_s5 + $0x3d8] sm:$0xf0]  ;;  %v2263_v49 = vor.u32 %v3160_v34, %v2262_v33  ;;  %v2880_v16 = vld [vmem:[%s5019_s5 + $0x4f4] sm:$0xf0]  ;;  %v3185_v21 = vld [vmem:[%s5019_s5 + $0xec] sm:$0xf] }
  0xa6   :  { %1719 = vmatmul.bf16.vlgmr.msra.gmra.mxu3 %v4001_v41  ;;  %1802 = vmatpush.bf16.msra.mxu2 %v2907_v35  ;;  %v2486_v35 = vld [vmem:[%s5019_s5 + $0x1c8] sm:$0xf]  ;;  %v2962_v47 = vld [vmem:[%s5019_s5 + $0x580] sm:$0xf]  ;;  %v2739_v56 = vor.u32 %v3279_v46, %v2738_v45  ;;  %v3311_v15 = vld [vmem:[%s5019_s5 + $0x4dc] sm:$0xf] }
  0xa7   :  { %1815 = vmatpush.bf16.msra.mxu3 %v3131_v36  ;;  %1778 = vmatpush.bf16.msra.mxu0 %v2403_v37  ;;  %v3216_v36 = vld [vmem:[%s5019_s5 + $0x1e0] sm:$0xf0]  ;;  %v3206_v37 = vld [vmem:[%s5019_s5 + $0x194] sm:$0xf]  ;;  %v2963_v57 = vor.u32 %v3335_v48, %v2962_v47  ;;  %v3367_v17 = vld [vmem:[%s5019_s5 + $0x69c] sm:$0xf] }
  0xa8   :  { %1791 = vmatpush.bf16.msra.mxu1 %v2627_v42  ;;  %v2991_v42 = vor.u32 %v3342_v30, %v2990_v29  ;;  %v2487_v50 = vor.u32 %v3216_v36, %v2486_v35  ;;  %v3104_v18 = vld [vmem:[%s5019_s5 + $0x6b4] sm:$0xf0]  ;;  %v2376_v22 = vld [vmem:[%s5019_s5 + $0x104] sm:$0xf0]  ;;  %v3304_v27 = vld [vmem:[%s5019_s5 + $0x4a4] sm:$0xf] }
  0xa9   :  { %v2852_v28 = vld [vmem:[%s5019_s5 + $0x4bc] sm:$0xf0]  ;;  %v3360_v29 = vld [vmem:[%s5019_s5 + $0x664] sm:$0xf]  ;;  %v3178_v33 = vld [vmem:[%s5019_s5 + $0xb4] sm:$0xf] }
  0xaa   :  { %1803 = vmatpush.bf16.msra.mxu2 %v2879_v51  ;;  %v2463_v51 = vor.u32 %v3206_v37, %v2460_v38  ;;  %v3076_v30 = vld [vmem:[%s5019_s5 + $0x67c] sm:$0xf0]  ;;  %v2348_v34 = vld [vmem:[%s5019_s5 + $0xcc] sm:$0xf0]  ;;  %v3234_v35 = vld [vmem:[%s5019_s5 + $0x274] sm:$0xf]  ;;  %v2855_v37 = vor.u32 %v3304_v27, %v2852_v28 }
  0xab   :  { %1816 = vmatpush.bf16.msra.mxu3 %v3103_v52  ;;  %1779 = vmatpush.bf16.msra.mxu0 %v2375_v54  ;;  %v2687_v52 = vor.u32 %v3262_v43, %v2684_v44  ;;  %v2432_v54 = vld [vmem:[%s5019_s5 + $0x174] sm:$0xf0]  ;;  %v2572_v36 = vld [vmem:[%s5019_s5 + $0x28c] sm:$0xf0]  ;;  %v3079_v38 = vor.u32 %v3360_v29, %v3076_v30  ;;  %v3353_v43 = vld [vmem:[%s5019_s5 + $0x62c] sm:$0xf]  ;;  %v2351_v45 = vor.u32 %v3178_v33, %v2348_v34 }
  0xac   :  { %1792 = vmatpush.bf16.msra.mxu1 %v2599_v55  ;;  %v3255_v55 = vld [vmem:[%s5019_s5 + $0x31c] sm:$0xf]  ;;  %v2435_v3 = vor.u32 %v3199_v53, %v2432_v54  ;;  %v3048_v44 = vld [vmem:[%s5019_s5 + $0x644] sm:$0xf0]  ;;  %v2575_v46 = vor.u32 %v3234_v35, %v2572_v36  ;;  %v2320_v48 = vld [vmem:[%s5019_s5 + $0x94] sm:$0xf0] }
  0xad   :  { %v2659_v4 = vor.u32 %v3255_v55, %v2656_v58  ;;  %v3171_v47 = vld [vmem:[%s5019_s5 + $0x7c] sm:$0xf]  ;;  %v3290_v53 = vld [vmem:[%s5019_s5 + $0x434] sm:$0xf]  ;;  %v2796_v54 = vld [vmem:[%s5019_s5 + $0x44c] sm:$0xf0] }
  0xae   :  { %1804 = vmatpush.bf16.msra.mxu2 %v2851_v63  ;;  %1732 = vmatmul.bf16.vlgmr.msrb.gmra.mxu0 %v3957_v11  ;;  %v3318_v63 = vld [vmem:[%s5019_s5 + $0x514] sm:$0xf]  ;;  %v3220_v61 = vld [vmem:[%s5019_s5 + $0x204] sm:$0xf]  ;;  %v2516_v62 = vld [vmem:[%s5019_s5 + $0x21c] sm:$0xf0] }
  0xaf   :  { %1817 = vmatpush.bf16.msra.mxu3 %v3075_v0  ;;  %1745 = vmatmul.bf16.vlgmr.msrb.gmra.mxu1 %v3959_v12  ;;  %v2908_v0 = vld [vmem:[%s5019_s5 + $0x52c] sm:$0xf0]  ;;  %v3346_v55 = vld [vmem:[%s5019_s5 + $0x5f4] sm:$0xf]  ;;  %v2438_v27 = vld [vmem:[%s5019_s5 + $0x160] sm:$0xf] }
  0xb0   :  { %1780 = vmatpush.bf16.msra.mxu0 %v2347_v5  ;;  %1793 = vmatpush.bf16.msra.mxu1 %v2571_v6  ;;  %v3192_v5 = vld [vmem:[%s5019_s5 + $0x124] sm:$0xf]  ;;  %v2711_v6 = vor.u32 %v3272_v60, %v2710_v59  ;;  %v2292_v60 = vld [vmem:[%s5019_s5 + $0x5c] sm:$0xf0]  ;;  %v3203_v28 = vld [vmem:[%s5019_s5 + $0x178] sm:$0xf0] }
  0xb1   :  { %v3164_v59 = vld [vmem:[%s5019_s5 + $0x44] sm:$0xf]  ;;  %v2662_v29 = vld [vmem:[%s5019_s5 + $0x320] sm:$0xf]  ;;  %v3269_v33 = vld [vmem:[%s5019_s5 + $0x38c] sm:$0xf] }
  0xb2   :  { %1805 = vmatpush.bf16.msra.mxu2 %v2823_v13  ;;  %v2911_v13 = vor.u32 %v3318_v63, %v2908_v0  ;;  %v2799_v63 = vor.u32 %v3290_v53, %v2796_v54  ;;  %v2712_v34 = vld [vmem:[%s5019_s5 + $0x3a4] sm:$0xf0]  ;;  %v3325_v35 = vld [vmem:[%s5019_s5 + $0x54c] sm:$0xf]  ;;  %v2886_v53 = vld [vmem:[%s5019_s5 + $0x4e0] sm:$0xf] }
  0xb3   :  { %1818 = vmatpush.bf16.msra.mxu3 %v3047_v14  ;;  %v3135_v14 = vor.u32 %v3374_v1, %v3132_v2  ;;  %v3283_v1 = vld [vmem:[%s5019_s5 + $0x3fc] sm:$0xf]  ;;  %v2768_v2 = vld [vmem:[%s5019_s5 + $0x414] sm:$0xf0]  ;;  %v2936_v36 = vld [vmem:[%s5019_s5 + $0x564] sm:$0xf0] }
  0xb4   :  { %1781 = vmatpush.bf16.msra.mxu0 %v2319_v19  ;;  %1794 = vmatpush.bf16.msra.mxu1 %v2543_v20  ;;  %v2407_v19 = vor.u32 %v3192_v5, %v2404_v8  ;;  %v2631_v20 = vor.u32 %v3248_v9, %v2628_v10  ;;  %v2295_v5 = vor.u32 %v3164_v59, %v2292_v60  ;;  %v2264_v8 = vld [vmem:[%s5019_s5 + $0x24] sm:$0xf0]  ;;  %v3213_v9 = vld [vmem:[%s5019_s5 + $0x1cc] sm:$0xf]  ;;  %v3315_v54 = vld [vmem:[%s5019_s5 + $0x4f8] sm:$0xf0] }
  0xb5   :  { %1758 = vmatmul.bf16.vlgmr.msrb.gmra.mxu2 %v3999_v40  ;;  %v2488_v10 = vld [vmem:[%s5019_s5 + $0x1e4] sm:$0xf0]  ;;  %v2382_v59 = vld [vmem:[%s5019_s5 + $0xf0] sm:$0xf]  ;;  %v3189_v60 = vld [vmem:[%s5019_s5 + $0x108] sm:$0xf0] }
  0xb6   :  { %1771 = vmatmul.bf16.vlgmr.msrb.gmra.mxu3 %v4001_v41  ;;  %1806 = vmatpush.bf16.msra.mxu2 %v2795_v25  ;;  %v2883_v25 = vor.u32 %v3311_v15, %v2880_v16  ;;  %v2771_v15 = vor.u32 %v3283_v1, %v2768_v2  ;;  %v2858_v1 = vld [vmem:[%s5019_s5 + $0x4a8] sm:$0xf]  ;;  %v3308_v2 = vld [vmem:[%s5019_s5 + $0x4c0] sm:$0xf0] }
  0xb7   :  { %1819 = vmatpush.bf16.msra.mxu3 %v3019_v26  ;;  %v3107_v26 = vor.u32 %v3367_v17, %v3104_v18  ;;  %v2690_v17 = vld [vmem:[%s5019_s5 + $0x358] sm:$0xf]  ;;  %v3266_v18 = vld [vmem:[%s5019_s5 + $0x370] sm:$0xf0] }
  0xb8   :  { %1782 = vmatpush.bf16.msra.mxu0 %v2291_v31  ;;  %1795 = vmatpush.bf16.msra.mxu1 %v2515_v32  ;;  %v2379_v31 = vor.u32 %v3185_v21, %v2376_v22  ;;  %v2603_v32 = vor.u32 %v3241_v23, %v2600_v24  ;;  %v3332_v21 = vld [vmem:[%s5019_s5 + $0x584] sm:$0xf]  ;;  %v2964_v22 = vld [vmem:[%s5019_s5 + $0x59c] sm:$0xf0]  ;;  %v2491_v24 = vor.u32 %v3213_v9, %v2488_v10 }
  0xb9   :  { %v2859_v9 = vor.u32 %v3308_v2, %v2858_v1  ;;  %v3200_v1 = vld [vmem:[%s5019_s5 + $0x164] sm:$0xf]  ;;  %v2440_v2 = vld [vmem:[%s5019_s5 + $0x17c] sm:$0xf0] }
  0xba   :  { %1807 = vmatpush.bf16.msra.mxu2 %v2767_v39  ;;  %v3297_v39 = vld [vmem:[%s5019_s5 + $0x46c] sm:$0xf] }
  0xbb   :  { %1820 = vmatpush.bf16.msra.mxu3 %v2991_v42  ;;  %v2824_v42 = vld [vmem:[%s5019_s5 + $0x484] sm:$0xf0] }
  0xbc   :  { %1783 = vmatpush.bf16.msra.mxu0 %v2263_v49  ;;  %1796 = vmatpush.bf16.msra.mxu1 %v2487_v50  ;;  %v3227_v49 = vld [vmem:[%s5019_s5 + $0x23c] sm:$0xf]  ;;  %v2544_v50 = vld [vmem:[%s5019_s5 + $0x254] sm:$0xf0] }
  0xbd   :  { %v2547_v58 = vor.u32 %v3227_v49, %v2544_v50 }
  0xbe   :  { %1808 = vmatpush.bf16.msra.mxu2 %v2739_v56  ;;  %v3020_v56 = vld [vmem:[%s5019_s5 + $0x60c] sm:$0xf0] }
  0xbf   :  { %1821 = vmatpush.bf16.msra.mxu3 %v2963_v57  ;;  %1784 = vmatmul.bf16.vlgmr.msra.gmra.mxu0 %v3957_v11  ;;  %v2323_v57 = vor.u32 %v3171_v47, %v2320_v48  ;;  %v3023_v0 = vor.u32 %v3346_v55, %v3020_v56  ;;  %v2410_v47 = vld [vmem:[%s5019_s5 + $0x128] sm:$0xf]  ;;  %v3196_v48 = vld [vmem:[%s5019_s5 + $0x140] sm:$0xf0]  ;;  %v3110_v55 = vld [vmem:[%s5019_s5 + $0x6a0] sm:$0xf] }
  0xc0   :  { %1828 = vmatpush.bf16.msrb.mxu0 %v2463_v51  ;;  %1841 = vmatpush.bf16.msrb.mxu1 %v2687_v52  ;;  %v2827_v51 = vor.u32 %v3297_v39, %v2824_v42  ;;  %v3051_v52 = vor.u32 %v3353_v43, %v3048_v44  ;;  %v3138_v39 = vld [vmem:[%s5019_s5 + $0x6d8] sm:$0xf]  ;;  %v3378_v42 = vld [vmem:[%s5019_s5 + $0x6f0] sm:$0xf0]  ;;  %v2439_v43 = vor.u32 %v3203_v28, %v2438_v27  ;;  %v3371_v56 = vld [vmem:[%s5019_s5 + $0x6b8] sm:$0xf0] }
  0xc1   :  { %1797 = vmatmul.bf16.vlgmr.msra.gmra.mxu1 %v3959_v12  ;;  %v3139_v50 = vor.u32 %v3378_v42, %v3138_v39  ;;  %v2802_v27 = vld [vmem:[%s5019_s5 + $0x438] sm:$0xf]  ;;  %v3294_v28 = vld [vmem:[%s5019_s5 + $0x450] sm:$0xf0]  ;;  %v2774_v39 = vld [vmem:[%s5019_s5 + $0x400] sm:$0xf] }
  0xc2   :  { %1809 = vmatpush.bf16.msra.mxu2 %v2711_v6  ;;  %v2519_v6 = vor.u32 %v3220_v61, %v2516_v62  ;;  %v2887_v61 = vor.u32 %v3315_v54, %v2886_v53  ;;  %v3111_v62 = vor.u32 %v3371_v56, %v3110_v55  ;;  %v3287_v42 = vld [vmem:[%s5019_s5 + $0x418] sm:$0xf0]  ;;  %v2468_v54 = vld [vmem:[%s5019_s5 + $0x1b4] sm:$0xf0] }
  0xc3   :  { %1822 = vmatpush.bf16.msra.mxu3 %v2935_v7  ;;  %v3157_v7 = vld [vmem:[%s5019_s5 + $0xc] sm:$0xf]  ;;  %v3207_v53 = vld [vmem:[%s5019_s5 + $0x19c] sm:$0xf]  ;;  %v2692_v56 = vld [vmem:[%s5019_s5 + $0x374] sm:$0xf0] }
  0xc4   :  { %1829 = vmatpush.bf16.msrb.mxu0 %v2435_v3  ;;  %1842 = vmatpush.bf16.msrb.mxu1 %v2659_v4  ;;  %v3339_v3 = vld [vmem:[%s5019_s5 + $0x5bc] sm:$0xf]  ;;  %v2992_v4 = vld [vmem:[%s5019_s5 + $0x5d4] sm:$0xf0]  ;;  %v2267_v23 = vor.u32 %v3157_v7, %v2264_v8  ;;  %v3182_v8 = vld [vmem:[%s5019_s5 + $0xd0] sm:$0xf0] }
  0xc5   :  { %1810 = vmatmul.bf16.vlgmr.msra.gmra.mxu2 %v3999_v40  ;;  %v2995_v16 = vor.u32 %v3339_v3, %v2992_v4  ;;  %v3082_v3 = vld [vmem:[%s5019_s5 + $0x668] sm:$0xf]  ;;  %v3364_v4 = vld [vmem:[%s5019_s5 + $0x680] sm:$0xf0]  ;;  %v2354_v7 = vld [vmem:[%s5019_s5 + $0xb8] sm:$0xf] }
  0xc6   :  { %1854 = vmatpush.bf16.msrb.mxu2 %v2911_v13  ;;  %1823 = vmatmul.bf16.vlgmr.msra.gmra.mxu3 %v4001_v41  ;;  %v2466_v13 = vld [vmem:[%s5019_s5 + $0x198] sm:$0xf]  ;;  %v3083_v10 = vor.u32 %v3364_v4, %v3082_v3  ;;  %v3263_v55 = vld [vmem:[%s5019_s5 + $0x35c] sm:$0xf]  ;;  %v3256_v3 = vld [vmem:[%s5019_s5 + $0x324] sm:$0xf] }
  0xc7   :  { %1867 = vmatpush.bf16.msrb.mxu3 %v3135_v14  ;;  %v3210_v14 = vld [vmem:[%s5019_s5 + $0x1b0] sm:$0xf0] }
  0xc8   :  { %1830 = vmatpush.bf16.msrb.mxu0 %v2407_v19  ;;  %1843 = vmatpush.bf16.msrb.mxu1 %v2631_v20  ;;  %v3276_v19 = vld [vmem:[%s5019_s5 + $0x3c4] sm:$0xf]  ;;  %v2740_v20 = vld [vmem:[%s5019_s5 + $0x3dc] sm:$0xf0] }
  0xc9   :  { %v2743_v30 = vor.u32 %v3276_v19, %v2740_v20  ;;  %v2355_v19 = vor.u32 %v3182_v8, %v2354_v7  ;;  %v2718_v7 = vld [vmem:[%s5019_s5 + $0x390] sm:$0xf]  ;;  %v3273_v8 = vld [vmem:[%s5019_s5 + $0x3a8] sm:$0xf0] }
  0xca   :  { %1855 = vmatpush.bf16.msrb.mxu2 %v2883_v25  ;;  %v2467_v25 = vor.u32 %v3210_v14, %v2466_v13  ;;  %v2578_v13 = vld [vmem:[%s5019_s5 + $0x278] sm:$0xf]  ;;  %v3238_v14 = vld [vmem:[%s5019_s5 + $0x290] sm:$0xf0] }
  0xcb   :  { %1868 = vmatpush.bf16.msrb.mxu3 %v3107_v26  ;;  %v2691_v26 = vor.u32 %v3266_v18, %v2690_v17  ;;  %v3054_v17 = vld [vmem:[%s5019_s5 + $0x630] sm:$0xf]  ;;  %v3357_v18 = vld [vmem:[%s5019_s5 + $0x648] sm:$0xf0]  ;;  %v2579_v20 = vor.u32 %v3238_v14, %v2578_v13  ;;  %v3319_v13 = vld [vmem:[%s5019_s5 + $0x51c] sm:$0xf] }
  0xcc   :  { %1831 = vmatpush.bf16.msrb.mxu0 %v2379_v31  ;;  %1844 = vmatpush.bf16.msrb.mxu1 %v2603_v32  ;;  %v2967_v31 = vor.u32 %v3332_v21, %v2964_v22  ;;  %v3259_v32 = vld [vmem:[%s5019_s5 + $0x338] sm:$0xf0]  ;;  %v2326_v21 = vld [vmem:[%s5019_s5 + $0x80] sm:$0xf]  ;;  %v2916_v14 = vld [vmem:[%s5019_s5 + $0x534] sm:$0xf0] }
  0xcd   :  { %v2663_v44 = vor.u32 %v3259_v32, %v2662_v29  ;;  %v3175_v22 = vld [vmem:[%s5019_s5 + $0x98] sm:$0xf0]  ;;  %v3026_v29 = vld [vmem:[%s5019_s5 + $0x5f8] sm:$0xf] }
  0xce   :  { %1856 = vmatpush.bf16.msrb.mxu2 %v2855_v37  ;;  %v2914_v37 = vld [vmem:[%s5019_s5 + $0x518] sm:$0xf] }
  0xcf   :  { %1869 = vmatpush.bf16.msrb.mxu3 %v3079_v38  ;;  %v3322_v38 = vld [vmem:[%s5019_s5 + $0x530] sm:$0xf0] }
  0xd0   :  { %1832 = vmatpush.bf16.msrb.mxu0 %v2351_v45  ;;  %1845 = vmatpush.bf16.msrb.mxu1 %v2575_v46  ;;  %v2715_v45 = vor.u32 %v3269_v33, %v2712_v34  ;;  %v2939_v46 = vor.u32 %v3325_v35, %v2936_v36  ;;  %v2915_v49 = vor.u32 %v3322_v38, %v2914_v37  ;;  %v2298_v33 = vld [vmem:[%s5019_s5 + $0x48] sm:$0xf]  ;;  %v3168_v34 = vld [vmem:[%s5019_s5 + $0x60] sm:$0xf0] }
  0xd1   :  { %v2803_v35 = vor.u32 %v3294_v28, %v2802_v27  ;;  %v2522_v37 = vld [vmem:[%s5019_s5 + $0x208] sm:$0xf]  ;;  %v3224_v38 = vld [vmem:[%s5019_s5 + $0x220] sm:$0xf0]  ;;  %v2888_v28 = vld [vmem:[%s5019_s5 + $0x4fc] sm:$0xf0] }
  0xd2   :  { %1857 = vmatpush.bf16.msrb.mxu2 %v2827_v51  ;;  %v2634_v51 = vld [vmem:[%s5019_s5 + $0x2e8] sm:$0xf]  ;;  %v3312_v27 = vld [vmem:[%s5019_s5 + $0x4e4] sm:$0xf] }
  0xd3   :  { %1870 = vmatpush.bf16.msrb.mxu3 %v3051_v52  ;;  %v3252_v52 = vld [vmem:[%s5019_s5 + $0x300] sm:$0xf0] }
  0xd4   :  { %1833 = vmatpush.bf16.msrb.mxu0 %v2323_v57  ;;  %1846 = vmatpush.bf16.msrb.mxu1 %v2547_v58  ;;  %v2411_v57 = vor.u32 %v3196_v48, %v2410_v47  ;;  %v2635_v58 = vor.u32 %v3252_v52, %v2634_v51  ;;  %v2270_v47 = vld [vmem:[%s5019_s5 + $0x10] sm:$0xf]  ;;  %v3161_v48 = vld [vmem:[%s5019_s5 + $0x28] sm:$0xf0] }
  0xd5   :  { %v3217_v52 = vld [vmem:[%s5019_s5 + $0x1e8] sm:$0xf0] }
  0xd6   :  { %1858 = vmatpush.bf16.msrb.mxu2 %v2799_v63  ;;  %v2606_v63 = vld [vmem:[%s5019_s5 + $0x2b0] sm:$0xf] }
  0xd7   :  { %1871 = vmatpush.bf16.msrb.mxu3 %v3023_v0  ;;  %v3245_v0 = vld [vmem:[%s5019_s5 + $0x2c8] sm:$0xf0] }
  0xd8   :  { %1834 = vmatpush.bf16.msrb.mxu0 %v2295_v5  ;;  %1847 = vmatpush.bf16.msrb.mxu1 %v2519_v6  ;;  %v2383_v5 = vor.u32 %v3189_v60, %v2382_v59  ;;  %v2607_v6 = vor.u32 %v3245_v0, %v2606_v63  ;;  %v2970_v59 = vld [vmem:[%s5019_s5 + $0x588] sm:$0xf]  ;;  %v3336_v60 = vld [vmem:[%s5019_s5 + $0x5a0] sm:$0xf0]  ;;  %v2471_v63 = vor.u32 %v3207_v53, %v2468_v54  ;;  %v3298_v53 = vld [vmem:[%s5019_s5 + $0x474] sm:$0xf] }
  0xd9   :  { %v2695_v0 = vor.u32 %v3263_v55, %v2692_v56  ;;  %v2832_v54 = vld [vmem:[%s5019_s5 + $0x48c] sm:$0xf0]  ;;  %v3354_v55 = vld [vmem:[%s5019_s5 + $0x634] sm:$0xf] }
  0xda   :  { %1859 = vmatpush.bf16.msrb.mxu2 %v2771_v15  ;;  %v2830_v15 = vld [vmem:[%s5019_s5 + $0x470] sm:$0xf] }
  0xdb   :  { %1872 = vmatpush.bf16.msrb.mxu3 %v2995_v16  ;;  %v3301_v16 = vld [vmem:[%s5019_s5 + $0x488] sm:$0xf0]  ;;  %v3056_v56 = vld [vmem:[%s5019_s5 + $0x64c] sm:$0xf0] }
  0xdc   :  { %1835 = vmatpush.bf16.msrb.mxu0 %v2267_v23  ;;  %1848 = vmatpush.bf16.msrb.mxu1 %v2491_v24  ;;  %v2831_v23 = vor.u32 %v3301_v16, %v2830_v15  ;;  %v3055_v24 = vor.u32 %v3357_v18, %v3054_v17  ;;  %v3375_v15 = vld [vmem:[%s5019_s5 + $0x6dc] sm:$0xf]  ;;  %v3140_v16 = vld [vmem:[%s5019_s5 + $0x6f4] sm:$0xf0]  ;;  %v2443_v17 = vor.u32 %v3200_v1, %v2440_v2 }
  0xdd   :  { %v3291_v1 = vld [vmem:[%s5019_s5 + $0x43c] sm:$0xf]  ;;  %v2804_v2 = vld [vmem:[%s5019_s5 + $0x454] sm:$0xf0] }
  0xde   :  { %1860 = vmatpush.bf16.msrb.mxu2 %v2743_v30  ;;  %v3350_v30 = vld [vmem:[%s5019_s5 + $0x610] sm:$0xf0] }
  0xdf   :  { %1873 = vmatpush.bf16.msrb.mxu3 %v2967_v31  ;;  %1836 = vmatmul.bf16.vlgmr.msrb.gmra.mxu0 %v3957_v11  ;;  %v2327_v31 = vor.u32 %v3175_v22, %v2326_v21  ;;  %v3027_v36 = vor.u32 %v3350_v30, %v3026_v29  ;;  %v3193_v21 = vld [vmem:[%s5019_s5 + $0x12c] sm:$0xf]  ;;  %v2412_v22 = vld [vmem:[%s5019_s5 + $0x144] sm:$0xf0]  ;;  %v3368_v29 = vld [vmem:[%s5019_s5 + $0x6a4] sm:$0xf] }
  0xe0   :  { %1880 = vmatpush.bf16.msra.mxu0 %v2467_v25  ;;  %1893 = vmatpush.bf16.msra.mxu1 %v2691_v26  ;;  %v2550_v25 = vld [vmem:[%s5019_s5 + $0x240] sm:$0xf]  ;;  %v3231_v26 = vld [vmem:[%s5019_s5 + $0x258] sm:$0xf0] }
  0xe1   :  { %1849 = vmatmul.bf16.vlgmr.msrb.gmra.mxu1 %v3959_v12  ;;  %v2551_v32 = vor.u32 %v3231_v26, %v2550_v25  ;;  %v3249_v25 = vld [vmem:[%s5019_s5 + $0x2ec] sm:$0xf]  ;;  %v2636_v26 = vld [vmem:[%s5019_s5 + $0x304] sm:$0xf0]  ;;  %v3112_v30 = vld [vmem:[%s5019_s5 + $0x6bc] sm:$0xf0] }
  0xe2   :  { %1861 = vmatpush.bf16.msrb.mxu2 %v2715_v45  ;;  %v2299_v45 = vor.u32 %v3168_v34, %v2298_v33  ;;  %v3186_v33 = vld [vmem:[%s5019_s5 + $0xf4] sm:$0xf]  ;;  %v2384_v34 = vld [vmem:[%s5019_s5 + $0x10c] sm:$0xf0] }
  0xe3   :  { %1874 = vmatpush.bf16.msrb.mxu3 %v2939_v46  ;;  %v2523_v46 = vor.u32 %v3224_v38, %v2522_v37  ;;  %v3242_v37 = vld [vmem:[%s5019_s5 + $0x2b4] sm:$0xf]  ;;  %v2608_v38 = vld [vmem:[%s5019_s5 + $0x2cc] sm:$0xf0] }
  0xe4   :  { %1881 = vmatpush.bf16.msra.mxu0 %v2439_v43  ;;  %1894 = vmatpush.bf16.msra.mxu1 %v2663_v44  ;;  %v2998_v43 = vld [vmem:[%s5019_s5 + $0x5c0] sm:$0xf]  ;;  %v3343_v44 = vld [vmem:[%s5019_s5 + $0x5d8] sm:$0xf0] }
  0xe5   :  { %1862 = vmatmul.bf16.vlgmr.msrb.gmra.mxu2 %v3999_v40  ;;  %v2999_v51 = vor.u32 %v3343_v44, %v2998_v43  ;;  %v3361_v43 = vld [vmem:[%s5019_s5 + $0x66c] sm:$0xf]  ;;  %v3084_v44 = vld [vmem:[%s5019_s5 + $0x684] sm:$0xf0] }
  0xe6   :  { %1906 = vmatpush.bf16.msra.mxu2 %v2915_v49  ;;  %1875 = vmatmul.bf16.vlgmr.msrb.gmra.mxu3 %v4001_v41  ;;  %v2494_v49 = vld [vmem:[%s5019_s5 + $0x1d0] sm:$0xf] }
  0xe7   :  { %1919 = vmatpush.bf16.msra.mxu3 %v3139_v50  ;;  %v2775_v50 = vor.u32 %v3287_v42, %v2774_v39  ;;  %v3305_v39 = vld [vmem:[%s5019_s5 + $0x4ac] sm:$0xf]  ;;  %v2860_v42 = vld [vmem:[%s5019_s5 + $0x4c4] sm:$0xf0] }
  0xe8   :  { %1882 = vmatpush.bf16.msra.mxu0 %v2411_v57  ;;  %1895 = vmatpush.bf16.msra.mxu1 %v2635_v58  ;;  %v2746_v57 = vld [vmem:[%s5019_s5 + $0x3c8] sm:$0xf]  ;;  %v3280_v58 = vld [vmem:[%s5019_s5 + $0x3e0] sm:$0xf0] }
  0xe9   :  { %v2747_v4 = vor.u32 %v3280_v58, %v2746_v57 }
  0xea   :  { %1907 = vmatpush.bf16.msra.mxu2 %v2887_v61  ;;  %v2271_v61 = vor.u32 %v3161_v48, %v2270_v47  ;;  %v3179_v47 = vld [vmem:[%s5019_s5 + $0xbc] sm:$0xf]  ;;  %v2356_v48 = vld [vmem:[%s5019_s5 + $0xd4] sm:$0xf0] }
  0xeb   :  { %1920 = vmatpush.bf16.msra.mxu3 %v3111_v62  ;;  %v2495_v62 = vor.u32 %v3217_v52, %v2494_v49  ;;  %v2863_v49 = vor.u32 %v3305_v39, %v2860_v42  ;;  %v2580_v52 = vld [vmem:[%s5019_s5 + $0x294] sm:$0xf0]  ;;  %v2359_v57 = vor.u32 %v3179_v47, %v2356_v48  ;;  %v3204_v42 = vld [vmem:[%s5019_s5 + $0x180] sm:$0xf0]  ;;  %v3270_v47 = vld [vmem:[%s5019_s5 + $0x394] sm:$0xf] }
  0xec   :  { %1883 = vmatpush.bf16.msra.mxu0 %v2383_v5  ;;  %1896 = vmatpush.bf16.msra.mxu1 %v2607_v6  ;;  %v2971_v5 = vor.u32 %v3336_v60, %v2970_v59  ;;  %v2664_v6 = vld [vmem:[%s5019_s5 + $0x33c] sm:$0xf0]  ;;  %v3172_v59 = vld [vmem:[%s5019_s5 + $0x84] sm:$0xf]  ;;  %v2720_v48 = vld [vmem:[%s5019_s5 + $0x3ac] sm:$0xf0] }
  0xed   :  { %v2667_v18 = vor.u32 %v3256_v3, %v2664_v6  ;;  %v2328_v60 = vld [vmem:[%s5019_s5 + $0x9c] sm:$0xf0]  ;;  %v3347_v3 = vld [vmem:[%s5019_s5 + $0x5fc] sm:$0xf] }
  0xee   :  { %1908 = vmatpush.bf16.msra.mxu2 %v2859_v9  ;;  %v2942_v9 = vld [vmem:[%s5019_s5 + $0x550] sm:$0xf] }
  0xef   :  { %1921 = vmatpush.bf16.msra.mxu3 %v3083_v10  ;;  %v3329_v10 = vld [vmem:[%s5019_s5 + $0x568] sm:$0xf0] }
  0xf0   :  { %1884 = vmatpush.bf16.msra.mxu0 %v2355_v19  ;;  %1897 = vmatpush.bf16.msra.mxu1 %v2579_v20  ;;  %v2719_v19 = vor.u32 %v3273_v8, %v2718_v7  ;;  %v2943_v20 = vor.u32 %v3329_v10, %v2942_v9  ;;  %v3165_v7 = vld [vmem:[%s5019_s5 + $0x4c] sm:$0xf]  ;;  %v2300_v8 = vld [vmem:[%s5019_s5 + $0x64] sm:$0xf0]  ;;  %v2807_v9 = vor.u32 %v3291_v1, %v2804_v2 }
  0xf1   :  { %v3253_v1 = vld [vmem:[%s5019_s5 + $0x308] sm:$0xf0] }
  0xf2   :  { %1909 = vmatpush.bf16.msra.mxu2 %v2831_v23  ;;  %v2919_v23 = vor.u32 %v3319_v13, %v2916_v14  ;;  %v3221_v13 = vld [vmem:[%s5019_s5 + $0x20c] sm:$0xf]  ;;  %v2524_v14 = vld [vmem:[%s5019_s5 + $0x224] sm:$0xf0] }
  0xf3   :  { %1922 = vmatpush.bf16.msra.mxu3 %v3055_v24  ;;  %v3143_v24 = vor.u32 %v3375_v15, %v3140_v16  ;;  %v3284_v15 = vld [vmem:[%s5019_s5 + $0x404] sm:$0xf]  ;;  %v2776_v16 = vld [vmem:[%s5019_s5 + $0x41c] sm:$0xf0] }
  0xf4   :  { %1885 = vmatpush.bf16.msra.mxu0 %v2327_v31  ;;  %1898 = vmatpush.bf16.msra.mxu1 %v2551_v32  ;;  %v2415_v31 = vor.u32 %v3193_v21, %v2412_v22  ;;  %v2639_v32 = vor.u32 %v3249_v25, %v2636_v26  ;;  %v3158_v21 = vld [vmem:[%s5019_s5 + $0x14] sm:$0xf]  ;;  %v2272_v22 = vld [vmem:[%s5019_s5 + $0x2c] sm:$0xf0] }
  0xf5   :  { %v2496_v26 = vld [vmem:[%s5019_s5 + $0x1ec] sm:$0xf0] }
  0xf6   :  { %1910 = vmatpush.bf16.msra.mxu2 %v2803_v35  ;;  %v2891_v35 = vor.u32 %v3312_v27, %v2888_v28  ;;  %v2474_v27 = vld [vmem:[%s5019_s5 + $0x1a0] sm:$0xf]  ;;  %v3211_v28 = vld [vmem:[%s5019_s5 + $0x1b8] sm:$0xf0] }
  0xf7   :  { %1923 = vmatpush.bf16.msra.mxu3 %v3027_v36  ;;  %v3115_v36 = vor.u32 %v3368_v29, %v3112_v30  ;;  %v2698_v29 = vld [vmem:[%s5019_s5 + $0x360] sm:$0xf]  ;;  %v3267_v30 = vld [vmem:[%s5019_s5 + $0x378] sm:$0xf0] }
  0xf8   :  { %1886 = vmatpush.bf16.msra.mxu0 %v2299_v45  ;;  %1899 = vmatpush.bf16.msra.mxu1 %v2523_v46  ;;  %v2387_v45 = vor.u32 %v3186_v33, %v2384_v34  ;;  %v2611_v46 = vor.u32 %v3242_v37, %v2608_v38  ;;  %v3333_v33 = vld [vmem:[%s5019_s5 + $0x58c] sm:$0xf]  ;;  %v2972_v34 = vld [vmem:[%s5019_s5 + $0x5a4] sm:$0xf0]  ;;  %v2475_v38 = vor.u32 %v3211_v28, %v2474_v27  ;;  %v2362_v27 = vld [vmem:[%s5019_s5 + $0xc0] sm:$0xf] }
  0xf9   :  { %v2446_v37 = vld [vmem:[%s5019_s5 + $0x168] sm:$0xf]  ;;  %v2699_v39 = vor.u32 %v3267_v30, %v2698_v29  ;;  %v3183_v28 = vld [vmem:[%s5019_s5 + $0xd8] sm:$0xf0] }
  0xfa   :  { %1911 = vmatpush.bf16.msra.mxu2 %v2775_v50  ;;  %v3087_v50 = vor.u32 %v3361_v43, %v3084_v44  ;;  %v2670_v43 = vld [vmem:[%s5019_s5 + $0x328] sm:$0xf]  ;;  %v3260_v44 = vld [vmem:[%s5019_s5 + $0x340] sm:$0xf0] }
  0xfb   :  { %1924 = vmatpush.bf16.msra.mxu3 %v2999_v51  ;;  %v3235_v51 = vld [vmem:[%s5019_s5 + $0x27c] sm:$0xf] }
  0xfc   :  { %1887 = vmatpush.bf16.msra.mxu0 %v2271_v61  ;;  %1900 = vmatpush.bf16.msra.mxu1 %v2495_v62  ;;  %v2583_v58 = vor.u32 %v3235_v51, %v2580_v52  ;;  %v2835_v61 = vor.u32 %v3298_v53, %v2832_v54  ;;  %v3059_v62 = vor.u32 %v3354_v55, %v3056_v56  ;;  %v2922_v51 = vld [vmem:[%s5019_s5 + $0x520] sm:$0xf]  ;;  %v3323_v52 = vld [vmem:[%s5019_s5 + $0x538] sm:$0xf0] }
  0xfd   :  { %v3146_v53 = vld [vmem:[%s5019_s5 + $0x6e0] sm:$0xf]  ;;  %v3379_v54 = vld [vmem:[%s5019_s5 + $0x6f8] sm:$0xf0]  ;;  %v2447_v56 = vor.u32 %v3204_v42, %v2446_v37  ;;  %v2363_v37 = vor.u32 %v3183_v28, %v2362_v27  ;;  %v2726_v28 = vld [vmem:[%s5019_s5 + $0x398] sm:$0xf] }
  0xfe   :  { %1912 = vmatpush.bf16.msra.mxu2 %v2747_v4  ;;  %v3028_v4 = vld [vmem:[%s5019_s5 + $0x614] sm:$0xf0]  ;;  %v4774_v55 = vld [vmem:[%s5020_s6] sm:$0x7f] }
  0xff   :  { %1925 = vmatpush.bf16.msra.mxu3 %v2971_v5  ;;  %1888 = vmatmul.bf16.vlgmr.msra.gmra.mxu0 %v3957_v11  ;;  %v2331_v5 = vor.u32 %v3172_v59, %v2328_v60  ;;  %v3031_v10 = vor.u32 %v3347_v3, %v3028_v4  ;;  %v2418_v60 = vld [vmem:[%s5019_s5 + $0x130] sm:$0xf]  ;;  %v506_v2 = vperm.slane %v4774_v55, 0  ;;  %v2894_v3 = vld [vmem:[%s5019_s5 + $0x4e8] sm:$0xf] }
 0x100   :  { %1932 = vmatpush.bf16.msrb.mxu0 %v2471_v63  ;;  %1945 = vmatpush.bf16.msrb.mxu1 %v2695_v0  ;;  %v3228_v63 = vld [vmem:[%s5019_s5 + $0x244] sm:$0xf]  ;;  %v2552_v0 = vld [vmem:[%s5019_s5 + $0x25c] sm:$0xf0] }
 0x101   :  { %1901 = vmatmul.bf16.vlgmr.msra.gmra.mxu1 %v3959_v12  ;;  %v2555_v6 = vor.u32 %v3228_v63, %v2552_v0  ;;  %v2923_v63 = vor.u32 %v3323_v52, %v2922_v51  ;;  %v3147_v0 = vor.u32 %v3379_v54, %v3146_v53  ;;  %v3316_v4 = vld [vmem:[%s5019_s5 + $0x500] sm:$0xf0]  ;;  %v3034_v51 = vld [vmem:[%s5019_s5 + $0x600] sm:$0xf]  ;;  %v3351_v52 = vld [vmem:[%s5019_s5 + $0x618] sm:$0xf0] }
 0x102   :  { %1913 = vmatpush.bf16.msra.mxu2 %v2719_v19  ;;  %v2303_v19 = vor.u32 %v3165_v7, %v2300_v8 }
 0x103   :  { %1926 = vmatpush.bf16.msra.mxu3 %v2943_v20  ;;  %v2527_v20 = vor.u32 %v3221_v13, %v2524_v14  ;;  %v2390_v13 = vld [vmem:[%s5019_s5 + $0xf8] sm:$0xf]  ;;  %v3190_v14 = vld [vmem:[%s5019_s5 + $0x110] sm:$0xf0] }
 0x104   :  { %1933 = vmatpush.bf16.msrb.mxu0 %v2443_v17  ;;  %1946 = vmatpush.bf16.msrb.mxu1 %v2667_v18  ;;  %v3340_v17 = vld [vmem:[%s5019_s5 + $0x5c4] sm:$0xf]  ;;  %v3000_v18 = vld [vmem:[%s5019_s5 + $0x5dc] sm:$0xf0] }
 0x105   :  { %1914 = vmatmul.bf16.vlgmr.msra.gmra.mxu2 %v3999_v40  ;;  %v3003_v25 = vor.u32 %v3340_v17, %v3000_v18  ;;  %v2614_v18 = vld [vmem:[%s5019_s5 + $0x2b8] sm:$0xf] }
 0x106   :  { %1958 = vmatpush.bf16.msrb.mxu2 %v2919_v23  ;;  %1927 = vmatmul.bf16.vlgmr.msra.gmra.mxu3 %v4001_v41  ;;  %v3214_v23 = vld [vmem:[%s5019_s5 + $0x1d4] sm:$0xf] }
 0x107   :  { %1971 = vmatpush.bf16.msrb.mxu3 %v3143_v24  ;;  %v2779_v24 = vor.u32 %v3284_v15, %v2776_v16  ;;  %v2895_v16 = vor.u32 %v3316_v4, %v2894_v3  ;;  %v3006_v3 = vld [vmem:[%s5019_s5 + $0x5c8] sm:$0xf]  ;;  %v3344_v4 = vld [vmem:[%s5019_s5 + $0x5e0] sm:$0xf0] }
 0x108   :  { %1934 = vmatpush.bf16.msrb.mxu0 %v2415_v31  ;;  %1947 = vmatpush.bf16.msrb.mxu1 %v2639_v32  ;;  %v3277_v31 = vld [vmem:[%s5019_s5 + $0x3cc] sm:$0xf]  ;;  %v2748_v32 = vld [vmem:[%s5019_s5 + $0x3e4] sm:$0xf0] }
 0x10a   :  { %1959 = vmatpush.bf16.msrb.mxu2 %v2891_v35  ;;  %v2275_v35 = vor.u32 %v3158_v21, %v2272_v22  ;;  %v3309_v21 = vld [vmem:[%s5019_s5 + $0x4c8] sm:$0xf0]  ;;  %v3090_v22 = vld [vmem:[%s5019_s5 + $0x670] sm:$0xf] }
 0x10b   :  { %1972 = vmatpush.bf16.msrb.mxu3 %v3115_v36  ;;  %v2499_v36 = vor.u32 %v3214_v23, %v2496_v26  ;;  %v3365_v23 = vld [vmem:[%s5019_s5 + $0x688] sm:$0xf0] }
 0x10c   :  { %1935 = vmatpush.bf16.msrb.mxu0 %v2387_v45  ;;  %1948 = vmatpush.bf16.msrb.mxu1 %v2611_v46  ;;  %v2751_v45 = vor.u32 %v3277_v31, %v2748_v32  ;;  %v2975_v46 = vor.u32 %v3333_v33, %v2972_v34  ;;  %v3091_v30 = vor.u32 %v3365_v23, %v3090_v22  ;;  %v2586_v31 = vld [vmem:[%s5019_s5 + $0x280] sm:$0xf]  ;;  %v3239_v32 = vld [vmem:[%s5019_s5 + $0x298] sm:$0xf0]  ;;  %v2838_v33 = vld [vmem:[%s5019_s5 + $0x478] sm:$0xf] }
 0x10d   :  { %v3302_v34 = vld [vmem:[%s5019_s5 + $0x490] sm:$0xf0] }
 0x10e   :  { %1960 = vmatpush.bf16.msrb.mxu2 %v2863_v49  ;;  %v3326_v49 = vld [vmem:[%s5019_s5 + $0x554] sm:$0xf] }
 0x10f   :  { %1973 = vmatpush.bf16.msrb.mxu3 %v3087_v50  ;;  %v2944_v50 = vld [vmem:[%s5019_s5 + $0x56c] sm:$0xf0] }
 0x110   :  { %1936 = vmatpush.bf16.msrb.mxu0 %v2359_v57  ;;  %1949 = vmatpush.bf16.msrb.mxu1 %v2583_v58  ;;  %v2671_v57 = vor.u32 %v3260_v44, %v2670_v43  ;;  %v2723_v58 = vor.u32 %v3270_v47, %v2720_v48  ;;  %v2947_v59 = vor.u32 %v3326_v49, %v2944_v50  ;;  %v2334_v43 = vld [vmem:[%s5019_s5 + $0x88] sm:$0xf]  ;;  %v3176_v44 = vld [vmem:[%s5019_s5 + $0xa0] sm:$0xf0]  ;;  %v2810_v49 = vld [vmem:[%s5019_s5 + $0x440] sm:$0xf] }
 0x111   :  { %v2558_v47 = vld [vmem:[%s5019_s5 + $0x248] sm:$0xf]  ;;  %v3232_v48 = vld [vmem:[%s5019_s5 + $0x260] sm:$0xf0]  ;;  %v3295_v50 = vld [vmem:[%s5019_s5 + $0x458] sm:$0xf0]  ;;  %v2335_v53 = vor.u32 %v3176_v44, %v2334_v43 }
 0x112   :  { %1961 = vmatpush.bf16.msrb.mxu2 %v2835_v61  ;;  %v3197_v61 = vld [vmem:[%s5019_s5 + $0x148] sm:$0xf0]  ;;  %v2559_v54 = vor.u32 %v3232_v48, %v2558_v47 }
 0x113   :  { %1974 = vmatpush.bf16.msrb.mxu3 %v3059_v62  ;;  %v2642_v62 = vld [vmem:[%s5019_s5 + $0x2f0] sm:$0xf]  ;;  %v2419_v7 = vor.u32 %v3197_v61, %v2418_v60  ;;  %v2811_v60 = vor.u32 %v3295_v50, %v2810_v49  ;;  %v3035_v61 = vor.u32 %v3351_v52, %v3034_v51 }
 0x114   :  { %1937 = vmatpush.bf16.msrb.mxu0 %v2331_v5  ;;  %1950 = vmatpush.bf16.msrb.mxu1 %v2555_v6  ;;  %v3118_v5 = vld [vmem:[%s5019_s5 + $0x6a8] sm:$0xf]  ;;  %v3372_v6 = vld [vmem:[%s5019_s5 + $0x6c0] sm:$0xf0]  ;;  %v2643_v8 = vor.u32 %v3253_v1, %v2642_v62  ;;  %v2530_v62 = vld [vmem:[%s5019_s5 + $0x210] sm:$0xf] }
 0x115   :  { %v3119_v17 = vor.u32 %v3372_v6, %v3118_v5 }
 0x116   :  { %1962 = vmatpush.bf16.msrb.mxu2 %v2807_v9 }
 0x117   :  { %1975 = vmatpush.bf16.msrb.mxu3 %v3031_v10 }
 0x118   :  { %1938 = vmatpush.bf16.msrb.mxu0 %v2303_v19  ;;  %1951 = vmatpush.bf16.msrb.mxu1 %v2527_v20  ;;  %v3246_v19 = vld [vmem:[%s5019_s5 + $0x2d0] sm:$0xf0]  ;;  %v2866_v20 = vld [vmem:[%s5019_s5 + $0x4b0] sm:$0xf] }
 0x119   :  { %v2615_v26 = vor.u32 %v3246_v19, %v2614_v18  ;;  %v2867_v29 = vor.u32 %v3309_v21, %v2866_v20  ;;  %v2754_v18 = vld [vmem:[%s5019_s5 + $0x3d0] sm:$0xf]  ;;  %v3281_v19 = vld [vmem:[%s5019_s5 + $0x3e8] sm:$0xf0] }
 0x11a   :  { %1963 = vmatpush.bf16.msrb.mxu2 %v2779_v24  ;;  %v2978_v20 = vld [vmem:[%s5019_s5 + $0x590] sm:$0xf]  ;;  %v3337_v21 = vld [vmem:[%s5019_s5 + $0x5a8] sm:$0xf0] }
 0x11b   :  { %1976 = vmatpush.bf16.msrb.mxu3 %v3003_v25  ;;  %v1681_v9 = vpop.f32.mrf.mxu0  ;;  %v2391_v25 = vor.u32 %v3190_v14, %v2390_v13  ;;  %v2979_v27 = vor.u32 %v3337_v21, %v2978_v20 }
 0x11c   :  { %1939 = vmatpush.bf16.msrb.mxu0 %v2275_v35  ;;  %1952 = vmatpush.bf16.msrb.mxu1 %v2499_v36  ;;  %v1694_v10 = vpop.f32.mrf.mxu1  ;;  %v1682_v15 = vadd.f32 %v1681_v9, %v506_v2  ;;  %v3062_v35 = vld [vmem:[%s5019_s5 + $0x638] sm:$0xf]  ;;  %v3358_v36 = vld [vmem:[%s5019_s5 + $0x650] sm:$0xf0]  ;;  %v3288_v2 = vld [vmem:[%s5019_s5 + $0x420] sm:$0xf0] }
 0x11d   :  { %v3162_v9 = vld [vmem:[%s5019_s5 + $0x30] sm:$0xf0] }
 0x11e   :  { %1964 = vmatpush.bf16.msrb.mxu2 %v2751_v45  ;;  %v1695_v24 = vadd.f32 %v1694_v10, %v1682_v15  ;;  %v2839_v45 = vor.u32 %v3302_v34, %v2838_v33  ;;  %v3007_v15 = vor.u32 %v3344_v4, %v3006_v3 }
 0x11f   :  { %1977 = vmatpush.bf16.msrb.mxu3 %v2975_v46  ;;  %1940 = vmatmul.bf16.vlgmr.msrb.gmra.mxu0 %v3957_v11  ;;  %v3063_v46 = vor.u32 %v3358_v36, %v3062_v35 }
 0x120   :  { %1984 = vmatpush.bf16.msra.mxu0 %v2475_v38  ;;  %1997 = vmatpush.bf16.msra.mxu1 %v2699_v39  ;;  %v2587_v38 = vor.u32 %v3239_v32, %v2586_v31  ;;  %v3330_v31 = vld [vmem:[%s5019_s5 + $0x570] sm:$0xf0] }
 0x121   :  { %1953 = vmatmul.bf16.vlgmr.msrb.gmra.mxu1 %v3959_v12 }
 0x122   :  { %1965 = vmatpush.bf16.msrb.mxu2 %v2723_v58 }
 0x123   :  { %1978 = vmatpush.bf16.msrb.mxu3 %v2947_v59  ;;  %v1683_v39 = vpop.f32.mrf.mxu0 }
 0x124   :  { %1985 = vmatpush.bf16.msra.mxu0 %v2447_v56  ;;  %1998 = vmatpush.bf16.msra.mxu1 %v2671_v57  ;;  %v1696_v42 = vpop.f32.mrf.mxu1  ;;  %v2306_v56 = vld [vmem:[%s5019_s5 + $0x50] sm:$0xf]  ;;  %v3169_v57 = vld [vmem:[%s5019_s5 + $0x68] sm:$0xf0] }
 0x125   :  { %1966 = vmatmul.bf16.vlgmr.msrb.gmra.mxu2 %v3999_v40  ;;  %v2307_v6 = vor.u32 %v3169_v57, %v2306_v56  ;;  %v507_v42 = vperm.slane %v4774_v55, 1 }
 0x126   :  { %2010 = vmatpush.bf16.msra.mxu2 %v2923_v63  ;;  %1979 = vmatmul.bf16.vlgmr.msrb.gmra.mxu3 %v4001_v41  ;;  %v3225_v63 = vld [vmem:[%s5019_s5 + $0x228] sm:$0xf0] }
 0x127   :  { %2023 = vmatpush.bf16.msra.mxu3 %v3147_v0  ;;  %v2782_v0 = vld [vmem:[%s5019_s5 + $0x408] sm:$0xf] }
 0x128   :  { %1986 = vmatpush.bf16.msra.mxu0 %v2419_v7  ;;  %1999 = vmatpush.bf16.msra.mxu1 %v2643_v8  ;;  %v1707_v58 = vpop.f32.mrf.mxu2  ;;  %v2531_v7 = vor.u32 %v3225_v63, %v2530_v62  ;;  %v2278_v8 = vld [vmem:[%s5019_s5 + $0x18] sm:$0xf]  ;;  %v2783_v14 = vor.u32 %v3288_v2, %v2782_v0 }
 0x129   :  { %v1720_v59 = vpop.f32.mrf.mxu3  ;;  %v1708_v1 = vadd.f32 %v1707_v58, %v1695_v24  ;;  %v2279_v22 = vor.u32 %v3162_v9, %v2278_v8 }
 0x12a   :  { %2011 = vmatpush.bf16.msra.mxu2 %v2895_v16  ;;  %v2502_v16 = vld [vmem:[%s5019_s5 + $0x1d8] sm:$0xf] }
 0x12b   :  { %2024 = vmatpush.bf16.msra.mxu3 %v3119_v17  ;;  %v4901_v5 = vadd.f32 %v1720_v59, %v1708_v1  ;;  %v1733_v10 = vpop.f32.mrf.mxu0  ;;  %v3218_v17 = vld [vmem:[%s5019_s5 + $0x1f0] sm:$0xf0]  ;;  %v509_v1 = vperm.slane %v4774_v55, 3 }
 0x12c   :  { %1987 = vmatpush.bf16.msra.mxu0 %v2391_v25  ;;  %2000 = vmatpush.bf16.msra.mxu1 %v2615_v26  ;;  %v1746_v13 = vpop.f32.mrf.mxu1  ;;  %v2503_v23 = vor.u32 %v3218_v17, %v2502_v16  ;;  %v2755_v26 = vor.u32 %v3281_v19, %v2754_v18 }
 0x12e   :  { %2012 = vmatpush.bf16.msra.mxu2 %v2867_v29  ;;  %v3274_v29 = vld [vmem:[%s5019_s5 + $0x3b0] sm:$0xf0] }
 0x12f   :  { %2025 = vmatpush.bf16.msra.mxu3 %v3091_v30  ;;  %v2950_v30 = vld [vmem:[%s5019_s5 + $0x558] sm:$0xf]  ;;  %v2727_v34 = vor.u32 %v3274_v29, %v2726_v28  ;;  %v510_v29 = vperm.slane %v4774_v55, 4  ;;  %s3435_s5 = smov [#allocation2]  }
 0x130   :  { %1988 = vmatpush.bf16.msra.mxu0 %v2363_v37  ;;  %2001 = vmatpush.bf16.msra.mxu1 %v2587_v38  ;;  %v1709_v24 = vpop.f32.mrf.mxu2  ;;  %v2951_v35 = vor.u32 %v3330_v31, %v2950_v30  ;;  %s2201_s23 = sshll.u32 %s3435_s5, 4  ;;  %s2202_s23 = int_to_ptr.vmem [resolvable:$true] %s2201_s23 }
 0x131   :  { %v1722_v25 = vpop.f32.mrf.mxu3 }
 0x132   :  { %2013 = vmatpush.bf16.msra.mxu2 %v2839_v45  ;;  %v508_v45 = vperm.slane %v4774_v55, 2 }
 0x133   :  { %2026 = vmatpush.bf16.msra.mxu3 %v3063_v46  ;;  %v1735_v32 = vpop.f32.mrf.mxu0  ;;  %v1734_v46 = vadd.f32 %v1733_v10, %v507_v42 }
 0x134   :  { %1989 = vmatpush.bf16.msra.mxu0 %v2335_v53  ;;  %2002 = vmatpush.bf16.msra.mxu1 %v2559_v54  ;;  %v1748_v33 = vpop.f32.mrf.mxu1 }
 0x135   :  { %v1747_v48 = vadd.f32 %v1746_v13, %v1734_v46 }
 0x136   :  { %2014 = vmatpush.bf16.msra.mxu2 %v2811_v60  ;;  %v2036_v60 = vsub.f32 0.0, %v4901_v5 }
 0x137   :  { %2027 = vmatpush.bf16.msra.mxu3 %v3035_v61 }
 0x138   :  { %1990 = vmatpush.bf16.msra.mxu0 %v2307_v6  ;;  %2003 = vmatpush.bf16.msra.mxu1 %v2531_v7  ;;  %v1759_v36 = vpop.f32.mrf.mxu2  ;;  %v2043_v0 = vmul.f32 1.442695, %v2036_v60 }
 0x139   :  { %v1772_v37 = vpop.f32.mrf.mxu3  ;;  %v1760_v51 = vadd.f32 %v1759_v36, %v1747_v48 }
 0x13a   :  { %2015 = vmatpush.bf16.msra.mxu2 %v2783_v14 }
 0x13b   :  { %2028 = vmatpush.bf16.msra.mxu3 %v3007_v15  ;;  %v1773_v53 = vadd.f32 %v1772_v37, %v1760_v51 }
 0x13c   :  { %1991 = vmatpush.bf16.msra.mxu0 %v2279_v22  ;;  %2004 = vmatpush.bf16.msra.mxu1 %v2503_v23  ;;  %v1785_v38 = vpop.f32.mrf.mxu0 }
 0x13d   :  { %v2037_v57 = vsub.f32 0.0, %v1773_v53 }
 0x13e   :  { %2016 = vmatpush.bf16.msra.mxu2 %v2755_v26  ;;  %v1798_v39 = vpop.f32.mrf.mxu1 }
 0x13f   :  { %2029 = vmatpush.bf16.msra.mxu3 %v2979_v27  ;;  %1992 = vmatmul.bf16.vlgmr.msra.gmra.mxu0 %v3957_v11  ;;  %v2045_v59 = vmul.f32 1.442695, %v2037_v57 }
 0x140   :  { %2005 = vmatmul.bf16.vlgmr.msra.gmra.mxu1 %v3959_v12  ;;  %v1761_v43 = vpop.f32.mrf.mxu2  ;;  %v1786_v12 = vadd.f32 %v1785_v38, %v508_v45 }
 0x141   :  { %v1774_v44 = vpop.f32.mrf.mxu3  ;;  %3381 = vpow2.f32 %v2045_v59 }
 0x142   :  { %2017 = vmatpush.bf16.msra.mxu2 %v2727_v34  ;;  %v1799_v52 = vadd.f32 %v1798_v39, %v1786_v12 }
 0x143   :  { %2030 = vmatpush.bf16.msra.mxu3 %v2951_v35 }
 0x144   :  { %v1787_v11 = vpop.f32.mrf.mxu0 }
 0x145   :  { %2018 = vmatmul.bf16.vlgmr.msra.gmra.mxu2 %v3999_v40 }
 0x146   :  { %2031 = vmatmul.bf16.vlgmr.msra.gmra.mxu3 %v4001_v41  ;;  %v1800_v47 = vpop.f32.mrf.mxu1 }
 0x147   :  { %v3382_v2 = vpop.eup %3381 }
 0x148   :  { %v1811_v49 = vpop.f32.mrf.mxu2  ;;  %v2058_v8 = vadd.f32 1.0, %v3382_v2 }
 0x149   :  { %v1824_v50 = vpop.f32.mrf.mxu3  ;;  %v1812_v40 = vadd.f32 %v1811_v49, %v1799_v52 }
 0x14a   :  { %v2090_v45 = vand.u32 2147483648, %v2058_v8  ;;  %v2088_v46 = vand.u32 2147483647, %v2058_v8  ;;  %vm2084_vm5 = vweird.f32 %v2058_v8 }
 0x14b   :  { %v1825_v41 = vadd.f32 %v1824_v50, %v1812_v40 }
 0x14c   :  { %v2091_v53 = vor.u32 1.1754944e-38, %v2090_v45  ;;  %vm2089_vm11 = vcmp.eq.f32.partialorder %v2088_v46, 8.507059e+37  ;;  %v512_v45 = vperm.slane %v4774_v55, 6 }
 0x14d   :  { %v2038_v58 = vsub.f32 0.0, %v1825_v41 }
 0x14f   :  { %v2047_v61 = vmul.f32 1.442695, %v2038_v58 }
 0x150   :  { %v1813_v54 = vpop.f32.mrf.mxu2 }
 0x151   :  { %v1826_v56 = vpop.f32.mrf.mxu3  ;;  %3383 = vpow2.f32 %v2047_v61 }
 0x152   :  { %3385 = vpow2.f32 %v2043_v0 }
 0x153   :  { %3387 = vrcp.f32 %v2058_v8 }
 0x157   :  { %v3384_v7 = vpop.eup %3383 }
 0x158   :  { %v3386_v10 = vpop.eup %3385  ;;  %v4947_v13 = vadd.f32 1.0, %v3384_v7 }
 0x159   :  { %v4949_v16 = vadd.f32 1.0, %v3386_v10  ;;  %v3388_v20 = vpop.eup %3387 }
 0x15a   :  { %3389 = vrcp.f32 %v4947_v13  ;;  %v2080_v24 = vmul.f32 %v3388_v20, %v2058_v8  ;;  %vm2085_vm4 = vweird.f32 %v3388_v20  ;;  %v2105_v48 = vand.u32 2147483648, %v4947_v13 }
 0x15b   :  { %3391 = vrcp.f32 %v4949_v16  ;;  %vm4962_vm7 = vmor %vm2084_vm5, %vm2085_vm4  ;;  %vm2099_vm9 = vweird.f32 %v4947_v13  ;;  %v2103_v40 = vand.u32 2147483647, %v4947_v13  ;;  %vm2069_vm13 = vweird.f32 %v4949_v16 }
 0x15c   :  { %v1837_v62 = vpop.f32.mrf.mxu0  ;;  %v2081_v28 = vsub.f32 1.0, %v2080_v24  ;;  %v2106_v60 = vor.u32 1.1754944e-38, %v2105_v48  ;;  %v2073_v2 = vand.u32 2147483647, %v4949_v16  ;;  %vm2182_vm4 = vcmask 1045508  }
 0x15d   :  { %v1838_v3 = vadd.f32 %v1837_v62, %v509_v1  ;;  %vm2104_vm0 = vcmp.eq.f32.partialorder %v2103_v40, 8.507059e+37 }
 0x15e   :  { %v1850_v63 = vpop.f32.mrf.mxu1  ;;  %v2082_v35 = vmul.f32 %v3388_v20, %v2081_v28  ;;  %vm2074_vm5 = vcmp.eq.f32.partialorder %v2073_v2, 8.507059e+37 }
 0x15f   :  { %v1851_v9 = vadd.f32 %v1850_v63, %v1838_v3  ;;  %v2075_v63 = vand.u32 2147483648, %v4949_v16 }
 0x160   :  { %v3390_v23 = vpop.eup %3389  ;;  %v2083_v42 = vadd.f32 %v3388_v20, %v2082_v35 }
 0x161   :  { %v4953_v25 = vpop.eup %3391  ;;  %v2095_v26 = vmul.f32 %v3390_v23, %v4947_v13  ;;  %vm2100_vm6 = vweird.f32 %v3390_v23  ;;  %v2076_v10 = vor.u32 1.1754944e-38, %v2075_v63 }
 0x162   :  { %v2065_v30 = vmul.f32 %v4953_v25, %v4949_v16  ;;  %vm2070_vm8 = vweird.f32 %v4953_v25  ;;  %v2087_v52 = vsel %vm4962_vm7, %v3388_v20, %v2083_v42  ;;  %vm4972_vm10 = vmor %vm2099_vm9, %vm2100_vm6  ;;  %vm2184_vm6 = vcmask 1043456  }
 0x163   :  { %v2096_v32 = vsub.f32 1.0, %v2095_v26  ;;  %v2092_v0 = vsel %vm2089_vm11, %v2091_v53, %v2087_v52  ;;  %vm4983_vm15 = vmor %vm2069_vm13, %vm2070_vm8  ;;  %vm2191_vm13 = vcmask 1043458  }
 0x164   :  { %v1839_v4 = vpop.f32.mrf.mxu0  ;;  %v2066_v37 = vsub.f32 1.0, %v2065_v30 }
 0x165   :  { %v2097_v38 = vmul.f32 %v3390_v23, %v2096_v32 }
 0x166   :  { %v1852_v6 = vpop.f32.mrf.mxu1  ;;  %v2067_v44 = vmul.f32 %v4953_v25, %v2066_v37 }
 0x167   :  { %v2098_v47 = vadd.f32 %v3390_v23, %v2097_v38 }
 0x168   :  { %v1863_v5 = vpop.f32.mrf.mxu2  ;;  %v2068_v56 = vadd.f32 %v4953_v25, %v2067_v44 }
 0x169   :  { %v1876_v14 = vpop.f32.mrf.mxu3  ;;  %v1864_v15 = vadd.f32 %v1863_v5, %v1851_v9  ;;  %v2102_v58 = vsel %vm4972_vm10, %v3390_v23, %v2098_v47  ;;  %v2176_v9 = vrot.slane %v2092_v0, 6  ;;  %v511_v23 = vperm.slane %v4774_v55, 5 }
 0x16a   :  { %v2107_v6 = vsel %vm2104_vm0, %v2106_v60, %v2102_v58  ;;  %v2072_v7 = vsel %vm4983_vm15, %v4953_v25, %v2068_v56 }
 0x16b   :  { %v1877_v17 = vadd.f32 %v1876_v14, %v1864_v15  ;;  %v2177_v5 = vrot.slane %v2107_v6, 4  ;;  %v2077_v15 = vsel %vm2074_vm5, %v2076_v10, %v2072_v7 }
 0x16c   :  { %v2181_v16 = vsel %vm161_vm2, %v2077_v15, %v2176_v9 }
 0x16d   :  { %v2039_v18 = vsub.f32 0.0, %v1877_v17 }
 0x16f   :  { %v2049_v19 = vmul.f32 1.442695, %v2039_v18 }
 0x170   :  { %v1865_v21 = vpop.f32.mrf.mxu2 }
 0x171   :  { %v1878_v22 = vpop.f32.mrf.mxu3  ;;  %3393 = vpow2.f32 %v2049_v19 }
 0x177   :  { %v3394_v27 = vpop.eup %3393 }
 0x178   :  { %v2060_v31 = vadd.f32 1.0, %v3394_v27 }
 0x17a   :  { %3395 = vrcp.f32 %v2060_v31  ;;  %v2120_v54 = vand.u32 2147483648, %v2060_v31  ;;  %v2118_v59 = vand.u32 2147483647, %v2060_v31  ;;  %vm2114_vm14 = vweird.f32 %v2060_v31 }
 0x17c   :  { %v1889_v33 = vpop.f32.mrf.mxu0  ;;  %v2121_v4 = vor.u32 1.1754944e-38, %v2120_v54  ;;  %vm2119_vm3 = vcmp.eq.f32.partialorder %v2118_v59, 8.507059e+37 }
 0x17d   :  { %v1890_v36 = vadd.f32 %v1889_v33, %v510_v29 }
 0x17e   :  { %v1902_v34 = vpop.f32.mrf.mxu1 }
 0x17f   :  { %v4959_v39 = vadd.f32 %v1902_v34, %v1890_v36 }
 0x180   :  { %v3396_v43 = vpop.eup %3395 }
 0x181   :  { %v2110_v11 = vmul.f32 %v3396_v43, %v2060_v31  ;;  %vm2115_vm12 = vweird.f32 %v3396_v43 }
 0x182   :  { %vm2116_vm1 = vmor %vm2114_vm14, %vm2115_vm12 }
 0x183   :  { %v2111_v51 = vsub.f32 1.0, %v2110_v11 }
 0x184   :  { %v1891_v49 = vpop.f32.mrf.mxu0 }
 0x185   :  { %v2112_v57 = vmul.f32 %v3396_v43, %v2111_v51 }
 0x186   :  { %v1904_v50 = vpop.f32.mrf.mxu1 }
 0x187   :  { %v2113_v3 = vadd.f32 %v3396_v43, %v2112_v57 }
 0x188   :  { %v1915_v61 = vpop.f32.mrf.mxu2 }
 0x189   :  { %v1928_v62 = vpop.f32.mrf.mxu3  ;;  %v2117_v8 = vsel %vm2116_vm1, %v3396_v43, %v2113_v3  ;;  %v1916_v32 = vadd.f32 %v1915_v61, %v4959_v39  ;;  %vm5001_vm1 = vmor %vm2191_vm13, %vm161_vm2 }
 0x18a   :  { %v2122_v13 = vsel %vm2119_vm3, %v2121_v4, %v2117_v8 }
 0x18b   :  { %v2178_v14 = vrot.slane %v2122_v13, 2  ;;  %v1929_v36 = vadd.f32 %v1928_v62, %v1916_v32 }
 0x18d   :  { %v2183_v17 = vsel %vm2182_vm4, %v2177_v5, %v2178_v14  ;;  %v2040_v38 = vsub.f32 0.0, %v1929_v36  ;;  %vm2193_vm4 = vcmask 128004  }
 0x18e   :  { %v2185_v20 = vsel %vm2184_vm6, %v2181_v16, %v2183_v17 }
 0x18f   :  { %2190 = vst [vmem:[#allocation2] sm:$0xff] %v2185_v20  ;;  %v2051_v44 = vmul.f32 1.442695, %v2040_v38 }
 0x190   :  { %v1917_v18 = vpop.f32.mrf.mxu2 }
 0x191   :  { %v1930_v19 = vpop.f32.mrf.mxu3 }
 0x19c   :  { %v1941_v21 = vpop.f32.mrf.mxu0 }
 0x19d   :  { %v1942_v24 = vadd.f32 %v1941_v21, %v511_v23 }
 0x19e   :  { %v1954_v22 = vpop.f32.mrf.mxu1 }
 0x19f   :  { %v1955_v27 = vadd.f32 %v1954_v22, %v1942_v24 }
 0x1a4   :  { %v1943_v25 = vpop.f32.mrf.mxu0 }
 0x1a6   :  { %v1956_v26 = vpop.f32.mrf.mxu1 }
 0x1a8   :  { %v1967_v28 = vpop.f32.mrf.mxu2 }
 0x1a9   :  { %v1980_v29 = vpop.f32.mrf.mxu3  ;;  %v1968_v30 = vadd.f32 %v1967_v28, %v1955_v27 }
 0x1ab   :  { %v1981_v31 = vadd.f32 %v1980_v29, %v1968_v30 }
 0x1ad   :  { %v2041_v35 = vsub.f32 0.0, %v1981_v31 }
 0x1af   :  { %v2053_v37 = vmul.f32 1.442695, %v2041_v35 }
 0x1b0   :  { %v1969_v33 = vpop.f32.mrf.mxu2 }
 0x1b1   :  { %v1982_v34 = vpop.f32.mrf.mxu3  ;;  %3397 = vpow2.f32 %v2053_v37 }
 0x1b2   :  { %3399 = vpow2.f32 %v2051_v44 }
 0x1b7   :  { %v3398_v46 = vpop.eup %3397 }
 0x1b8   :  { %v2062_v47 = vadd.f32 1.0, %v3398_v46  ;;  %v3400_v39 = vpop.eup %3399 }
 0x1b9   :  { %v2061_v40 = vadd.f32 1.0, %v3400_v39 }
 0x1ba   :  { %3401 = vrcp.f32 %v2062_v47  ;;  %v2150_v3 = vand.u32 2147483648, %v2062_v47  ;;  %vm2144_vm8 = vweird.f32 %v2062_v47  ;;  %v2148_v7 = vand.u32 2147483647, %v2062_v47 }
 0x1bb   :  { %3403 = vrcp.f32 %v2061_v40  ;;  %vm2129_vm10 = vweird.f32 %v2061_v40  ;;  %v2135_v5 = vand.u32 2147483648, %v2061_v40  ;;  %v2133_v20 = vand.u32 2147483647, %v2061_v40 }
 0x1bc   :  { %v1993_v42 = vpop.f32.mrf.mxu0  ;;  %v2151_v10 = vor.u32 1.1754944e-38, %v2150_v3  ;;  %vm2149_vm12 = vcmp.eq.f32.partialorder %v2148_v7, 8.507059e+37 }
 0x1bd   :  { %v2006_v43 = vpop.f32.mrf.mxu1  ;;  %v1994_v11 = vadd.f32 %v1993_v42, %v512_v45  ;;  %v2136_v26 = vor.u32 1.1754944e-38, %v2135_v5 }
 0x1bf   :  { %v2007_v49 = vadd.f32 %v2006_v43, %v1994_v11 }
 0x1c0   :  { %v3402_v54 = vpop.eup %3401 }
 0x1c1   :  { %v2140_v58 = vmul.f32 %v3402_v54, %v2062_v47  ;;  %v3404_v59 = vpop.eup %3403  ;;  %vm2145_vm7 = vweird.f32 %v3402_v54 }
 0x1c2   :  { %v2125_v62 = vmul.f32 %v3404_v59, %v2061_v40  ;;  %vm2146_vm9 = vmor %vm2144_vm8, %vm2145_vm7  ;;  %vm2130_vm11 = vweird.f32 %v3404_v59  ;;  %vm2134_vm7 = vcmp.eq.f32.partialorder %v2133_v20, 8.507059e+37 }
 0x1c3   :  { %v2141_v60 = vsub.f32 1.0, %v2140_v58  ;;  %vm4996_vm15 = vmor %vm2129_vm10, %vm2130_vm11 }
 0x1c4   :  { %v1995_v12 = vpop.f32.mrf.mxu0  ;;  %v2126_v1 = vsub.f32 1.0, %v2125_v62  ;;  %vm2194_vm8 = vmor %vm2193_vm4, %vm5001_vm1 }
 0x1c5   :  { %v2008_v48 = vpop.f32.mrf.mxu1  ;;  %v2142_v0 = vmul.f32 %v3402_v54, %v2141_v60 }
 0x1c6   :  { %v2127_v6 = vmul.f32 %v3404_v59, %v2126_v1 }
 0x1c7   :  { %v2143_v2 = vadd.f32 %v3402_v54, %v2142_v0 }
 0x1c8   :  { %v2019_v50 = vpop.f32.mrf.mxu2  ;;  %v2128_v15 = vadd.f32 %v3404_v59, %v2127_v6 }
 0x1c9   :  { %v2032_v51 = vpop.f32.mrf.mxu3  ;;  %v2020_v52 = vadd.f32 %v2019_v50, %v2007_v49  ;;  %v2147_v9 = vsel %vm2146_vm9, %v3402_v54, %v2143_v2 }
 0x1ca   :  { %v2152_v17 = vsel %vm2149_vm12, %v2151_v10, %v2147_v9  ;;  %v2132_v23 = vsel %vm4996_vm15, %v3404_v59, %v2128_v15 }
 0x1cb   :  { %v2033_v53 = vadd.f32 %v2032_v51, %v2020_v52  ;;  %v2179_v25 = vrot.slane %v2152_v17, 6  ;;  %v2137_v29 = vsel %vm2134_vm7, %v2136_v26, %v2132_v23 }
 0x1cd   :  { %v2042_v41 = vsub.f32 0.0, %v2033_v53  ;;  %v2186_v31 = vsel %vm161_vm2, %v2137_v29, %v2179_v25 }
 0x1cf   :  { %v2055_v56 = vmul.f32 1.442695, %v2042_v41 }
 0x1d0   :  { %v2021_v57 = vpop.f32.mrf.mxu2 }
 0x1d1   :  { %v2034_v55 = vpop.f32.mrf.mxu3  ;;  %3405 = vpow2.f32 %v2055_v56 }
 0x1d7   :  { %v3406_v61 = vpop.eup %3405 }
 0x1d8   :  { %v2063_v63 = vadd.f32 1.0, %v3406_v61 }
 0x1da   :  { %3407 = vrcp.f32 %v2063_v63  ;;  %v2165_v14 = vand.u32 2147483648, %v2063_v63  ;;  %v2163_v18 = vand.u32 2147483647, %v2063_v63  ;;  %vm2159_vm0 = vweird.f32 %v2063_v63 }
 0x1dc   :  { %v2166_v24 = vor.u32 1.1754944e-38, %v2165_v14  ;;  %vm2164_vm5 = vcmp.eq.f32.partialorder %v2163_v18, 8.507059e+37 }
 0x1e0   :  { %v3408_v4 = vpop.eup %3407 }
 0x1e1   :  { %v2155_v8 = vmul.f32 %v3408_v4, %v2063_v63  ;;  %vm2160_vm14 = vweird.f32 %v3408_v4 }
 0x1e2   :  { %vm2161_vm3 = vmor %vm2159_vm0, %vm2160_vm14 }
 0x1e3   :  { %v2156_v13 = vsub.f32 1.0, %v2155_v8 }
 0x1e5   :  { %v2157_v16 = vmul.f32 %v3408_v4, %v2156_v13 }
 0x1e7   :  { %v2158_v21 = vadd.f32 %v3408_v4, %v2157_v16 }
 0x1e9   :  { %v2162_v27 = vsel %vm2161_vm3, %v3408_v4, %v2158_v21 }
 0x1ea   :  { %v2167_v28 = vsel %vm2164_vm5, %v2166_v24, %v2162_v27 }
 0x1eb   :  { %v2180_v30 = vrot.slane %v2167_v28, 4 }
 0x1ed   :  { %v2187_v32 = vsel %vm2184_vm6, %v2186_v31, %v2180_v30 }
 0x1ee   :  { %2195 = vst.msk [vmem:[#allocation2 + $0x8] sm:$0x3f] %vm2194_vm8, %v2187_v32 }
 0x1ef   :  { %2206 = dma.vmem_to_hbm [thread:$0]  %s2202_s23, 224, %s2204_s25, [#allocation3]  }
 0x1f0   :  { %3433 = dma.done.wait [#allocation3], 224  }
 0x1f1   :  { %3434 = vsyncadd [#allocation3], 4294967072 }
 0x1f2   :  { %2211 = vsyncpa [#allocation3], 1 }

</bundles_post_ra>
